<compile_context>
chip_gen: v5e
topology: v5e:2x2
jax: 0.10.0
libtpu: 0.0.40
codegen_flags: <defaults>
</compile_context>

<pallas_src>
import functools

import jax
import jax.numpy as jnp
from jax.experimental import pallas as pl
from jax.experimental.pallas import tpu as pltpu

_LANE = 128      # TPU lane width; hidden/output feature dims padded to this
_TILE_B = 128    # max batch rows per grid step (MXU M dimension)


def _round_up(n, m):
    return ((n + m - 1) // m) * m


def _policy_mlp_kernel(x_ref, w1_ref, b1_ref, w2_ref, b2_ref, w3_ref, b3_ref,
                       out_ref, *, out_size):
    """Fused MLP tile: (Linear+ReLU) x2 -> Linear -> masked Softmax(dim=-1).

    Operates on one (tile_b, *) batch tile.  Hidden/output feature dims are
    lane-padded (multiples of 128); `out_size` is the true (unpadded) number of
    logits and padded columns are masked out of the softmax.  w2/w3 are bf16
    (MXU inputs); accumulation and all element-wise math are f32.
    """
    x = x_ref[...]                                               # (tile_b, in_size) f32

    # Layer 1: Linear + ReLU (f32; K = real in_size, weight is tiny).
    h1 = jnp.dot(x, w1_ref[...], preferred_element_type=jnp.float32) + b1_ref[...]
    h1 = jnp.maximum(h1, 0.0)

    # Layer 2: Linear + ReLU (bf16 MXU inputs, f32 accumulate).
    h2 = jnp.dot(h1.astype(jnp.bfloat16), w2_ref[...],
                 preferred_element_type=jnp.float32) + b2_ref[...]
    h2 = jnp.maximum(h2, 0.0)

    # Layer 3: Linear (bf16 MXU inputs, f32 accumulate).
    logits = jnp.dot(h2.astype(jnp.bfloat16), w3_ref[...],
                     preferred_element_type=jnp.float32) + b3_ref[...]

    # Mask lane-padding columns so they get exactly zero probability.
    col = jax.lax.broadcasted_iota(jnp.int32, logits.shape, dimension=1)
    logits = jnp.where(col < out_size, logits, -1e30)

    # Numerically stable softmax over the last axis (exact division so rows
    # sum to 1 to f32 precision).
    m = jnp.max(logits, axis=-1, keepdims=True)
    e = jnp.exp(logits - m)
    denom = jnp.sum(e, axis=-1, keepdims=True)
    out_ref[...] = (e / denom).astype(out_ref.dtype)


def prepare_params(params):
    """One-time padding/casting of weights (hoisted out of the per-call path).

    params: dict with w1 (in,H), b1 (H,), w2 (H,H), b2 (H,), w3 (H,out), b3 (out,)
    returns dict of lane-padded arrays: w1/b1/b2/b3 in f32, w2/w3 in bf16.
    """
    w1, b1 = params["w1"], params["b1"]
    w2, b2 = params["w2"], params["b2"]
    w3, b3 = params["w3"], params["b3"]

    in_size, hidden = w1.shape
    out_size = w3.shape[1]
    h_p = _round_up(hidden, _LANE)
    out_p = _round_up(out_size, _LANE)

    f32, bf16 = jnp.float32, jnp.bfloat16
    return {
        "w1": jnp.zeros((in_size, h_p), f32).at[:, :hidden].set(w1.astype(f32)),
        "b1": jnp.zeros((1, h_p), f32).at[0, :hidden].set(b1.astype(f32)),
        "w2": jnp.zeros((h_p, h_p), bf16).at[:hidden, :hidden].set(w2.astype(bf16)),
        "b2": jnp.zeros((1, h_p), f32).at[0, :hidden].set(b2.astype(f32)),
        "w3": jnp.zeros((h_p, out_p), bf16).at[:hidden, :out_size].set(w3.astype(bf16)),
        "b3": jnp.zeros((1, out_p), f32).at[0, :out_size].set(b3.astype(f32)),
    }


def policy_network_forward(state, padded_params, *, out_size):
    """Pallas forward pass.

    state:         (B, inputSize) float32
    padded_params: output of prepare_params()
    out_size:      true (unpadded) number of actions
    returns        (B, out_size) float32 softmax probabilities
    """
    w1, b1 = padded_params["w1"], padded_params["b1"]
    w2, b2 = padded_params["w2"], padded_params["b2"]
    w3, b3 = padded_params["w3"], padded_params["b3"]

    B, in_size = state.shape
    assert w1.shape[0] == in_size
    h_p = w1.shape[1]
    out_p = w3.shape[1]

    # Adaptive batch tiling: one step for small batches, 128-row tiles otherwise
    # (B=256 -> 2 "parallel" steps, an even split across the 2 TCs on v7x).
    if B <= _TILE_B:
        tile_b = max(8, _round_up(B, 8))
        b_p = tile_b
    else:
        tile_b = _TILE_B
        b_p = _round_up(B, tile_b)

    x = state.astype(jnp.float32)
    if b_p != B:
        x = jnp.pad(x, ((0, b_p - B), (0, 0)))

    grid = (b_p // tile_b,)
    const = lambda i: (0, 0)  # weights/biases: same block every step -> VMEM-resident

    # Advisory cost hint for XLA's scheduler around the custom call.
    flops = 2 * b_p * (in_size * h_p + h_p * h_p + h_p * out_p)
    bytes_accessed = (
        x.size * 4 + w1.size * 4 + b1.size * 4 + w2.size * 2 + b2.size * 4
        + w3.size * 2 + b3.size * 4 + b_p * out_p * 4
    )
    cost = pl.CostEstimate(flops=flops,
                           transcendentals=b_p * out_p,
                           bytes_accessed=bytes_accessed)

    kernel = functools.partial(_policy_mlp_kernel, out_size=out_size)

    out_padded = pl.pallas_call(
        kernel,
        out_shape=jax.ShapeDtypeStruct((b_p, out_p), jnp.float32),
        grid_spec=pltpu.PrefetchScalarGridSpec(
            num_scalar_prefetch=0,
            grid=grid,
            in_specs=[
                pl.BlockSpec((tile_b, in_size), lambda i: (i, 0)),  # state tile (unpadded feature axis)
                pl.BlockSpec((in_size, h_p), const),                # w1 (f32)
                pl.BlockSpec((1, h_p), const),                      # b1
                pl.BlockSpec((h_p, h_p), const),                    # w2 (bf16)
                pl.BlockSpec((1, h_p), const),                      # b2
                pl.BlockSpec((h_p, out_p), const),                  # w3 (bf16)
                pl.BlockSpec((1, out_p), const),                    # b3
            ],
            out_specs=pl.BlockSpec((tile_b, out_p), lambda i: (i, 0)),
        ),
        compiler_params=pltpu.CompilerParams(
            dimension_semantics=("parallel",),  # shard batch grid across TCs on v7x
        ),
        cost_estimate=cost,
    )(x, w1, b1, w2, b2, w3, b3)

    return out_padded[:B, :out_size]


def init_params(key, input_size, output_size, hidden_size):
    """Deterministic init mimicking PyTorch nn.Linear default (uniform +/- 1/sqrt(fan_in))."""
    def linear(k, fan_in, fan_out):
        kw, kb = jax.random.split(k)
        bound = 1.0 / jnp.sqrt(jnp.float32(fan_in))
        w = jax.random.uniform(kw, (fan_in, fan_out), jnp.float32, -bound, bound)
        b = jax.random.uniform(kb, (fan_out,), jnp.float32, -bound, bound)
        return w, b

    k1, k2, k3 = jax.random.split(key, 3)
    w1, b1 = linear(k1, input_size, hidden_size)
    w2, b2 = linear(k2, hidden_size, hidden_size)
    w3, b3 = linear(k3, hidden_size, output_size)
    return {"w1": w1, "b1": b1, "w2": w2, "b2": b2, "w3": w3, "b3": b3}


def _reference_forward(state, p):
    h1 = jnp.maximum(state @ p["w1"] + p["b1"], 0.0)
    h2 = jnp.maximum(h1 @ p["w2"] + p["b2"], 0.0)
    logits = h2 @ p["w3"] + p["b3"]
    return jax.nn.softmax(logits, axis=-1)


if __name__ == "__main__":
    # LunarLander-v2: observation dim 8, action dim 4.  hiddenSize=200 is the
    # module default.  Batch = 256 (a rollout chunk) -> two 128-row grid steps.
    INPUT_SIZE, OUTPUT_SIZE, HIDDEN_SIZE, BATCH = 8, 4, 200, 256

    key = jax.random.PRNGKey(0)
    k_params, k_state = jax.random.split(key)

    params = init_params(k_params, INPUT_SIZE, OUTPUT_SIZE, HIDDEN_SIZE)
    state = jax.random.normal(k_state, (BATCH, INPUT_SIZE), dtype=jnp.float32)

    # Pad/cast weights ONCE (not per forward call).
    padded_params = prepare_params(params)

    fwd = jax.jit(functools.partial(policy_network_forward, out_size=OUTPUT_SIZE))
    probs = jax.block_until_ready(fwd(state, padded_params))

    # Sanity checks against a pure-JAX f32 reference.  Exact division -> rows
    # sum to 1 to f32 precision; bf16 matmul inputs (layers 2-3) -> compare
    # values with a correspondingly loose tolerance.
    ref = jax.block_until_ready(_reference_forward(state, params))
    assert probs.shape == (BATCH, OUTPUT_SIZE)
    assert jnp.allclose(jnp.sum(probs, axis=-1), 1.0, atol=1e-4)
    assert jnp.max(jnp.abs(probs - ref)) < 2e-2

    print("KERNEL_OK")
</pallas_src>

<mosaic_0001>
module attributes {stable_mosaic.version = 11 : i64} {
  func.func @_policy_mlp_kernel(%arg0: i32, %arg1: memref<128x8xf32, #tpu.memory_space<vmem>>, %arg2: memref<8x256xf32, #tpu.memory_space<vmem>>, %arg3: memref<1x256xf32, #tpu.memory_space<vmem>>, %arg4: memref<256x256xbf16, #tpu.memory_space<vmem>>, %arg5: memref<1x256xf32, #tpu.memory_space<vmem>>, %arg6: memref<256x128xbf16, #tpu.memory_space<vmem>>, %arg7: memref<1x128xf32, #tpu.memory_space<vmem>>, %arg8: memref<128x128xf32, #tpu.memory_space<vmem>>) attributes {dimension_semantics = [#tpu.dimension_semantics<parallel>], iteration_bounds = array<i64: 2>, scalar_prefetch = 0 : i64, scratch_operands = 0 : i64, tpu.core_type = #tpu.core_type<tc>, window_params = [{transform_indices = @transform_0, window_bounds = array<i64: 128, 8>}, {pipeline_mode = #tpu.pipeline_mode<synchronous>, transform_indices = @transform_1, window_bounds = array<i64: 8, 256>}, {pipeline_mode = #tpu.pipeline_mode<synchronous>, transform_indices = @transform_2, window_bounds = array<i64: 1, 256>}, {pipeline_mode = #tpu.pipeline_mode<synchronous>, transform_indices = @transform_3, window_bounds = array<i64: 256, 256>}, {pipeline_mode = #tpu.pipeline_mode<synchronous>, transform_indices = @transform_4, window_bounds = array<i64: 1, 256>}, {pipeline_mode = #tpu.pipeline_mode<synchronous>, transform_indices = @transform_5, window_bounds = array<i64: 256, 128>}, {pipeline_mode = #tpu.pipeline_mode<synchronous>, transform_indices = @transform_6, window_bounds = array<i64: 1, 128>}, {transform_indices = @transform_7, window_bounds = array<i64: 128, 128>}]} {
    %c0 = arith.constant 0 : index
    %c0_0 = arith.constant 0 : index
    %0 = vector.load %arg1[%c0, %c0_0] : memref<128x8xf32, #tpu.memory_space<vmem>>, vector<128x8xf32>
    %c0_1 = arith.constant 0 : index
    %c0_2 = arith.constant 0 : index
    %1 = vector.load %arg2[%c0_1, %c0_2] : memref<8x256xf32, #tpu.memory_space<vmem>>, vector<8x256xf32>
    %cst = arith.constant dense<0.000000e+00> : vector<128x256xf32>
    %2 = tpu.matmul %0, %1, %cst {dimension_numbers = #tpu.dot_dimension_numbers<[1], [0], [0], [1], [0, 0, 1, 1], [], []>} : vector<128x8xf32>, vector<8x256xf32>, vector<128x256xf32> -> vector<128x256xf32>
    %c0_3 = arith.constant 0 : index
    %c0_4 = arith.constant 0 : index
    %3 = vector.load %arg3[%c0_3, %c0_4] : memref<1x256xf32, #tpu.memory_space<vmem>>, vector<1x256xf32>
    %4 = vector.broadcast %3 : vector<1x256xf32> to vector<128x256xf32>
    %5 = arith.addf %2, %4 : vector<128x256xf32>
    %cst_5 = arith.constant 0.000000e+00 : f32
    %6 = vector.broadcast %cst_5 : f32 to vector<128x256xf32>
    %7 = arith.maximumf %5, %6 : vector<128x256xf32>
    %8 = arith.truncf %7 : vector<128x256xf32> to vector<128x256xbf16>
    %c0_6 = arith.constant 0 : index
    %c0_7 = arith.constant 0 : index
    %9 = vector.load %arg4[%c0_6, %c0_7] : memref<256x256xbf16, #tpu.memory_space<vmem>>, vector<256x256xbf16>
    %cst_8 = arith.constant dense<0.000000e+00> : vector<128x256xf32>
    %10 = tpu.matmul %8, %9, %cst_8 {dimension_numbers = #tpu.dot_dimension_numbers<[1], [0], [0], [1], [0, 0, 1, 1], [], []>} : vector<128x256xbf16>, vector<256x256xbf16>, vector<128x256xf32> -> vector<128x256xf32>
    %c0_9 = arith.constant 0 : index
    %c0_10 = arith.constant 0 : index
    %11 = vector.load %arg5[%c0_9, %c0_10] : memref<1x256xf32, #tpu.memory_space<vmem>>, vector<1x256xf32>
    %12 = vector.broadcast %11 : vector<1x256xf32> to vector<128x256xf32>
    %13 = arith.addf %10, %12 : vector<128x256xf32>
    %cst_11 = arith.constant 0.000000e+00 : f32
    %14 = vector.broadcast %cst_11 : f32 to vector<128x256xf32>
    %15 = arith.maximumf %13, %14 : vector<128x256xf32>
    %16 = arith.truncf %15 : vector<128x256xf32> to vector<128x256xbf16>
    %c0_12 = arith.constant 0 : index
    %c0_13 = arith.constant 0 : index
    %17 = vector.load %arg6[%c0_12, %c0_13] : memref<256x128xbf16, #tpu.memory_space<vmem>>, vector<256x128xbf16>
    %cst_14 = arith.constant dense<0.000000e+00> : vector<128x128xf32>
    %18 = tpu.matmul %16, %17, %cst_14 {dimension_numbers = #tpu.dot_dimension_numbers<[1], [0], [0], [1], [0, 0, 1, 1], [], []>} : vector<128x256xbf16>, vector<256x128xbf16>, vector<128x128xf32> -> vector<128x128xf32>
    %c0_15 = arith.constant 0 : index
    %c0_16 = arith.constant 0 : index
    %19 = vector.load %arg7[%c0_15, %c0_16] : memref<1x128xf32, #tpu.memory_space<vmem>>, vector<1x128xf32>
    %20 = vector.broadcast %19 : vector<1x128xf32> to vector<128x128xf32>
    %21 = arith.addf %18, %20 : vector<128x128xf32>
    %22 = tpu.iota {dimensions = array<i32: 1>} : vector<128x128xi32>
    %c4_i32 = arith.constant 4 : i32
    %23 = vector.broadcast %c4_i32 : i32 to vector<128x128xi32>
    %24 = arith.cmpi slt, %22, %23 : vector<128x128xi32>
    %cst_17 = arith.constant -1.000000e+30 : f32
    %25 = vector.broadcast %cst_17 : f32 to vector<128x128xf32>
    %26 = arith.select %24, %21, %25 : vector<128x128xi1>, vector<128x128xf32>
    %cst_18 = arith.constant dense<0xFF800000> : vector<128xf32>
    %27 = vector.multi_reduction <maximumf>, %26, %cst_18 [1] : vector<128x128xf32> to vector<128xf32>
    %28 = vector.shape_cast %27 : vector<128xf32> to vector<128x1xf32>
    %29 = vector.broadcast %28 : vector<128x1xf32> to vector<128x128xf32>
    %30 = arith.subf %26, %29 : vector<128x128xf32>
    %31 = math.exp %30 : vector<128x128xf32>
    %cst_19 = arith.constant dense<0.000000e+00> : vector<128xf32>
    %32 = vector.multi_reduction <add>, %31, %cst_19 [1] : vector<128x128xf32> to vector<128xf32>
    %33 = vector.shape_cast %32 : vector<128xf32> to vector<128x1xf32>
    %34 = vector.broadcast %33 : vector<128x1xf32> to vector<128x128xf32>
    %35 = arith.divf %31, %34 : vector<128x128xf32>
    %c0_20 = arith.constant 0 : index
    %c0_21 = arith.constant 0 : index
    %36 = vector.load %arg8[%c0_20, %c0_21] : memref<128x128xf32, #tpu.memory_space<vmem>>, vector<128x128xf32>
    tpu.vector_store %arg8[%c0_20, %c0_21], %35 {strides = array<i32>} : memref<128x128xf32, #tpu.memory_space<vmem>>, vector<128x128xf32>,
    return
  }
  func.func @transform_0(%arg0: i32) -> (i32, i32) {
    %c0_i32 = arith.constant 0 : i32
    %c0_i32_0 = arith.constant 0 : i32
    return %arg0, %c0_i32 : i32, i32
  }
  func.func @transform_1(%arg0: i32) -> (i32, i32) {
    %c0_i32 = arith.constant 0 : i32
    %c0_i32_0 = arith.constant 0 : i32
    %c0_i32_1 = arith.constant 0 : i32
    return %c0_i32, %c0_i32_0 : i32, i32
  }
  func.func @transform_2(%arg0: i32) -> (i32, i32) {
    %c0_i32 = arith.constant 0 : i32
    %c0_i32_0 = arith.constant 0 : i32
    %c0_i32_1 = arith.constant 0 : i32
    return %c0_i32, %c0_i32_0 : i32, i32
  }
  func.func @transform_3(%arg0: i32) -> (i32, i32) {
    %c0_i32 = arith.constant 0 : i32
    %c0_i32_0 = arith.constant 0 : i32
    %c0_i32_1 = arith.constant 0 : i32
    return %c0_i32, %c0_i32_0 : i32, i32
  }
  func.func @transform_4(%arg0: i32) -> (i32, i32) {
    %c0_i32 = arith.constant 0 : i32
    %c0_i32_0 = arith.constant 0 : i32
    %c0_i32_1 = arith.constant 0 : i32
    return %c0_i32, %c0_i32_0 : i32, i32
  }
  func.func @transform_5(%arg0: i32) -> (i32, i32) {
    %c0_i32 = arith.constant 0 : i32
    %c0_i32_0 = arith.constant 0 : i32
    %c0_i32_1 = arith.constant 0 : i32
    return %c0_i32, %c0_i32_0 : i32, i32
  }
  func.func @transform_6(%arg0: i32) -> (i32, i32) {
    %c0_i32 = arith.constant 0 : i32
    %c0_i32_0 = arith.constant 0 : i32
    %c0_i32_1 = arith.constant 0 : i32
    return %c0_i32, %c0_i32_0 : i32, i32
  }
  func.func @transform_7(%arg0: i32) -> (i32, i32) {
    %c0_i32 = arith.constant 0 : i32
    %c0_i32_0 = arith.constant 0 : i32
    return %arg0, %c0_i32 : i32, i32
  }
}

</mosaic_0001>

<bundles_post_ra>
// kernel: policy_network_forward.1
= control target key start
LH: loop header
LB: loop body
LE: loop exit
PB: predicated region body
PF: predicated region fallthrough
CT: control target
= control target key end

     0   :  { %12 = vsyncpa [#allocation3], 0  ;;  %s2782_s0 = inlined_call_operand.vmem [shape: f32[256,8], index: 0, kind: input, shape index: {}]   ;;  %s2783_s1 = inlined_call_operand.vmem [shape: f32[8,256], index: 1, kind: input, shape index: {}]   ;;  %s2784_s2 = inlined_call_operand.vmem [shape: f32[1,256], index: 2, kind: input, shape index: {}]   ;;  %s2785_s3 = inlined_call_operand.vmem [shape: bf16[256,256], index: 3, kind: input, shape index: {}]   ;;  %s2786_s4 = inlined_call_operand.vmem [shape: f32[1,256], index: 4, kind: input, shape index: {}]   ;;  %s2787_s5 = inlined_call_operand.hbm [shape: bf16[256,128], index: 5, kind: input, shape index: {}]   ;;  %s2788_s6 = inlined_call_operand.hbm [shape: f32[1,128], index: 6, kind: input, shape index: {}]   ;;  %s2789_s7 = inlined_call_operand.vmem [shape: f32[256,128], index: 7, kind: output, shape index: {}]  }
   0x1   :  { %13 = vsyncpa [#allocation5], 0  ;;  %s2205_s24 = smov 0  }
   0x2 LB: > { %s225_s27 = sshll.u32 %s2787_s5, 4  ;;  %s1702_s28 = sadd.s32 4294967295, %s2159_s24   ;;  %s2159_s24 = sphi %s2205_s24, %s19_s24   ;;  %s226_s27 = int_to_ptr.hbm [resolvable:$true] %s225_s27 }
   0x3   : > { %p1704_p0 = scmp.ge.s32.totalorder %s2159_s24, 1  ;;  %p202_p1 = scmp.lt.s32.totalorder %s2159_s24, 3 }
   0x4   : > { %p2216_p2 = scmp.eq.s32.totalorder %s1702_s28, 0  ;;  %s2161_s8 = smov [#allocation2]  }
   0x5   : > { %p2220_p3 = pnand %p1704_p0, %p202_p1  ;;  %s227_s9 = sshll.u32 %s2161_s8, 4  ;;  %s228_s9 = int_to_ptr.vmem [resolvable:$true] %s227_s9 }
   0x6   : > { %s240_s12 = sshll.u32 %s2788_s6, 4  ;;  %s2162_s13 = smov [#allocation4]   ;;  %s241_s12 = int_to_ptr.hbm [resolvable:$true] %s240_s12 }
   0x7   : > { %p1997_p4 = pneg %p2220_p3  ;;  %s242_s14 = sshll.u32 %s2162_s13, 4  ;;  %s243_s14 = int_to_ptr.vmem [resolvable:$true] %s242_s14 }
   0x8   : > { %s2163_s15 = smov 64   ;;  %s2164_s16 = smov 4  }
   0x9   : > { %p1998_p5 = pnand %p2216_p2, %p1997_p4  ;;  %264 = sbr.rel (%p2220_p3) target bundleno = 832 (0x340), region = 48 }
   0xb   : > { %2000 = dma.hbm_to_vmem [thread:$0]  (!%p1998_p5), %s226_s27, 2048, %s228_s9, [#allocation3], %s2163_s15, %s2163_s15, %s2164_s16  }
   0xc   : > { %2003 = dma.hbm_to_vmem [thread:$0]  (!%p1998_p5), %s241_s12, 16, %s243_s14, [#allocation5]  }
   0xe   : > { %2150 = dma.done.wait (%p2216_p2), [#allocation3], 2048  }
   0xf   : > { %2152 = vsyncadd (%p2216_p2), [#allocation3], 4294965248 }
  0x10   : > { %2154 = dma.done.wait (%p2216_p2), [#allocation5], 16  }
  0x11   : > { %2156 = vsyncadd (%p2216_p2), [#allocation5], 4294967280  ;;  %s1711_s17 = sshll.u32 %s1702_s28, 4  ;;  %vm338_vm0 = vcmask 64512   ;;  %v330_v0 = vld [vmem:[%s2783_s1] sm:$0xff]  ;;  %v331_v1 = vld [vmem:[%s2783_s1 + $0x8] sm:$0xff] }
  0x12   : > { %p303_p6 = scmp.lt.s32.totalorder %s1711_s17, 31  ;;  %402 = vmatpush.msra.mxu0 %v330_v0  ;;  %467 = vmatpush.msra.mxu1 %v331_v1  ;;  %v1955_v3 = vld [vmem:[%s2785_s3 + $0x74] sm:$0xf]  ;;  %v1807_v4 = vld [vmem:[%s2785_s3 + $0x78] sm:$0xf0] }
  0x13   : > { %v1971_v5 = vld [vmem:[%s2785_s3 + $0xf4] sm:$0xf]  ;;  %v1871_v6 = vld [vmem:[%s2785_s3 + $0xf8] sm:$0xf0]  ;;  %v1810_v7 = vor.u32 %v1955_v3, %v1807_v4  ;;  %v1953_v9 = vld [vmem:[%s2785_s3 + $0x64] sm:$0xf] }
  0x14   : > { %s2793_s17 = smov (!%p303_p6, %s1711_s17), 31  ;;  %v1874_v8 = vor.u32 %v1971_v5, %v1871_v6  ;;  %v1799_v10 = vld [vmem:[%s2785_s3 + $0x68] sm:$0xf0]  ;;  %v1969_v11 = vld [vmem:[%s2785_s3 + $0xe4] sm:$0xf] }
  0x15   : > { %s1712_s18 = sshll.u32 %s2793_s17, 3  ;;  %v1863_v12 = vld [vmem:[%s2785_s3 + $0xe8] sm:$0xf0]  ;;  %861 = vmatpush.bf16.msrb.mxu0 %v1810_v7  ;;  %v1802_v13 = vor.u32 %v1953_v9, %v1799_v10  ;;  %v1951_v17 = vld [vmem:[%s2785_s3 + $0x54] sm:$0xf] }
  0x16   : > { %s2249_s21 = scalar_lea.vmem %s2782_s0, %s1712_s18  ;;  %910 = vmatpush.bf16.msrb.mxu1 %v1874_v8  ;;  %v1866_v14 = vor.u32 %v1969_v11, %v1863_v12  ;;  %v1791_v18 = vld [vmem:[%s2785_s3 + $0x58] sm:$0xf0]  ;;  %v1967_v19 = vld [vmem:[%s2785_s3 + $0xd4] sm:$0xf]  ;;  %v1949_v25 = vld [vmem:[%s2785_s3 + $0x44] sm:$0xf]  ;;  %s2745_s27 = scalar_lea.vmem %s2789_s7, %s1712_s18 }
  0x17   : > { %v314_v2 = vld [vmem:[%s2249_s21] sm:$0xff]  ;;  %v315_v15 = vld [vmem:[%s2249_s21 + $0x8] sm:$0xff]  ;;  %v316_v16 = vld [vmem:[%s2249_s21 + $0x10] sm:$0xff]  ;;  %v1794_v20 = vor.u32 %v1951_v17, %v1791_v18 }
  0x18   : > { %1715 = vmatmul.msk.f32.vlgmr.msra.gmra.mxu0 %vm338_vm0, %v314_v2  ;;  %1731 = vmatmul.msk.f32.vlgmr.msra.gmra.mxu1 %vm338_vm0, %v314_v2  ;;  %v1855_v21 = vld [vmem:[%s2785_s3 + $0xd8] sm:$0xf0]  ;;  %v318_v24 = vld [vmem:[%s2249_s21 + $0x20] sm:$0xff]  ;;  %v1783_v26 = vld [vmem:[%s2785_s3 + $0x48] sm:$0xf0] }
  0x19   : > { %862 = vmatpush.bf16.msrb.mxu0 %v1802_v13  ;;  %v1858_v22 = vor.u32 %v1967_v19, %v1855_v21  ;;  %v317_v23 = vld [vmem:[%s2249_s21 + $0x18] sm:$0xff]  ;;  %v1965_v27 = vld [vmem:[%s2785_s3 + $0xc4] sm:$0xf]  ;;  %v1786_v28 = vor.u32 %v1949_v25, %v1783_v26  ;;  %v1847_v29 = vld [vmem:[%s2785_s3 + $0xc8] sm:$0xf0] }
  0x1a   : > { %911 = vmatpush.bf16.msrb.mxu1 %v1866_v14  ;;  %v1850_v30 = vor.u32 %v1965_v27, %v1847_v29  ;;  %v319_v31 = vld [vmem:[%s2249_s21 + $0x28] sm:$0xff]  ;;  %v320_v32 = vld [vmem:[%s2249_s21 + $0x30] sm:$0xff]  ;;  %v1775_v34 = vld [vmem:[%s2785_s3 + $0x38] sm:$0xf0] }
  0x1b   : > { %v1947_v33 = vld [vmem:[%s2785_s3 + $0x34] sm:$0xf]  ;;  %v1839_v37 = vld [vmem:[%s2785_s3 + $0xb8] sm:$0xf0]  ;;  %v322_v40 = vld [vmem:[%s2249_s21 + $0x40] sm:$0xff] }
  0x1c   : > { %v1963_v35 = vld [vmem:[%s2785_s3 + $0xb4] sm:$0xf]  ;;  %v1778_v36 = vor.u32 %v1947_v33, %v1775_v34  ;;  %v321_v39 = vld [vmem:[%s2249_s21 + $0x38] sm:$0xff]  ;;  %v1945_v41 = vld [vmem:[%s2785_s3 + $0x24] sm:$0xf] }
  0x1d   : > { %863 = vmatpush.bf16.msrb.mxu0 %v1794_v20  ;;  %v1842_v38 = vor.u32 %v1963_v35, %v1839_v37  ;;  %v1767_v42 = vld [vmem:[%s2785_s3 + $0x28] sm:$0xf0]  ;;  %v1961_v43 = vld [vmem:[%s2785_s3 + $0xa4] sm:$0xf]  ;;  %v1805_v48 = vld [vmem:[%s2785_s3 + $0x70] sm:$0xf] }
  0x1e   : > { %912 = vmatpush.bf16.msrb.mxu1 %v1858_v22  ;;  %v1770_v44 = vor.u32 %v1945_v41, %v1767_v42  ;;  %v1831_v45 = vld [vmem:[%s2785_s3 + $0xa8] sm:$0xf0]  ;;  %v1956_v49 = vld [vmem:[%s2785_s3 + $0x74] sm:$0xf0]  ;;  %v1869_v50 = vld [vmem:[%s2785_s3 + $0xf0] sm:$0xf] }
  0x1f   : > { %v1834_v46 = vor.u32 %v1961_v43, %v1831_v45  ;;  %v323_v47 = vld [vmem:[%s2249_s21 + $0x48] sm:$0xff]  ;;  %v1806_v51 = vor.u32 %v1956_v49, %v1805_v48  ;;  %v1972_v52 = vld [vmem:[%s2785_s3 + $0xf4] sm:$0xf0]  ;;  %v324_v54 = vld [vmem:[%s2249_s21 + $0x50] sm:$0xff] }
  0x20   : > { %1716 = vmatmul.msk.f32.gmra.mxu0 %vm338_vm0, %v315_v15  ;;  %1732 = vmatmul.msk.f32.gmra.mxu1 %vm338_vm0, %v315_v15  ;;  %v1870_v53 = vor.u32 %v1972_v52, %v1869_v50  ;;  %v1797_v55 = vld [vmem:[%s2785_s3 + $0x60] sm:$0xf]  ;;  %v1954_v56 = vld [vmem:[%s2785_s3 + $0x64] sm:$0xf0]  ;;  %v1943_v61 = vld [vmem:[%s2785_s3 + $0x14] sm:$0xf] }
  0x21   : > { %864 = vmatpush.bf16.msrb.mxu0 %v1786_v28  ;;  %763 = vmatpush.bf16.msra.mxu2 %v1806_v51  ;;  %v1861_v57 = vld [vmem:[%s2785_s3 + $0xe0] sm:$0xf]  ;;  %v1798_v58 = vor.u32 %v1954_v56, %v1797_v55  ;;  %v1970_v59 = vld [vmem:[%s2785_s3 + $0xe4] sm:$0xf0]  ;;  %v1759_v62 = vld [vmem:[%s2785_s3 + $0x18] sm:$0xf0] }
  0x22   : > { %913 = vmatpush.bf16.msrb.mxu1 %v1850_v30  ;;  %812 = vmatpush.bf16.msra.mxu3 %v1870_v53  ;;  %v1862_v60 = vor.u32 %v1970_v59, %v1861_v57  ;;  %v1789_v63 = vld [vmem:[%s2785_s3 + $0x50] sm:$0xf]  ;;  %v1762_v0 = vor.u32 %v1943_v61, %v1759_v62  ;;  %v1952_v1 = vld [vmem:[%s2785_s3 + $0x54] sm:$0xf0]  ;;  %v1959_v6 = vld [vmem:[%s2785_s3 + $0x94] sm:$0xf] }
  0x23   : > { %v1853_v2 = vld [vmem:[%s2785_s3 + $0xd0] sm:$0xf]  ;;  %v1968_v3 = vld [vmem:[%s2785_s3 + $0xd4] sm:$0xf0]  ;;  %v1790_v4 = vor.u32 %v1952_v1, %v1789_v63  ;;  %v1823_v7 = vld [vmem:[%s2785_s3 + $0x98] sm:$0xf0] }
  0x24   : > { %v1854_v5 = vor.u32 %v1968_v3, %v1853_v2  ;;  %v1826_v8 = vor.u32 %v1959_v6, %v1823_v7  ;;  %v325_v9 = vld [vmem:[%s2249_s21 + $0x58] sm:$0xff]  ;;  %v1781_v10 = vld [vmem:[%s2785_s3 + $0x40] sm:$0xf]  ;;  %v1950_v11 = vld [vmem:[%s2785_s3 + $0x44] sm:$0xf0] }
  0x25   : > { %865 = vmatpush.bf16.msrb.mxu0 %v1778_v36  ;;  %764 = vmatpush.bf16.msra.mxu2 %v1798_v58  ;;  %v1845_v12 = vld [vmem:[%s2785_s3 + $0xc0] sm:$0xf]  ;;  %v1782_v13 = vor.u32 %v1950_v11, %v1781_v10  ;;  %v1966_v14 = vld [vmem:[%s2785_s3 + $0xc4] sm:$0xf0]  ;;  %v1948_v17 = vld [vmem:[%s2785_s3 + $0x34] sm:$0xf0] }
  0x26   : > { %914 = vmatpush.bf16.msrb.mxu1 %v1842_v38  ;;  %813 = vmatpush.bf16.msra.mxu3 %v1862_v60  ;;  %v1846_v15 = vor.u32 %v1966_v14, %v1845_v12  ;;  %v1837_v18 = vld [vmem:[%s2785_s3 + $0xb0] sm:$0xf]  ;;  %v1964_v20 = vld [vmem:[%s2785_s3 + $0xb4] sm:$0xf0]  ;;  %v326_v22 = vld [vmem:[%s2249_s21 + $0x60] sm:$0xff] }
  0x27   : > { %v1838_v21 = vor.u32 %v1964_v20, %v1837_v18  ;;  %v1829_v26 = vld [vmem:[%s2785_s3 + $0xa0] sm:$0xf]  ;;  %v1962_v27 = vld [vmem:[%s2785_s3 + $0xa4] sm:$0xf0]  ;;  %v1941_v29 = vld [vmem:[%s2785_s3 + $0x4] sm:$0xf] }
  0x28   : > { %1717 = vmatmul.msk.f32.gmra.mxu0 %vm338_vm0, %v316_v16  ;;  %1733 = vmatmul.msk.f32.gmra.mxu1 %vm338_vm0, %v316_v16  ;;  %v1773_v16 = vld [vmem:[%s2785_s3 + $0x30] sm:$0xf]  ;;  %v1830_v28 = vor.u32 %v1962_v27, %v1829_v26  ;;  %v1751_v30 = vld [vmem:[%s2785_s3 + $0x8] sm:$0xf0]  ;;  %v1944_v33 = vld [vmem:[%s2785_s3 + $0x14] sm:$0xf0] }
  0x29   : > { %866 = vmatpush.bf16.msrb.mxu0 %v1770_v44  ;;  %765 = vmatpush.bf16.msra.mxu2 %v1790_v4  ;;  %v1774_v19 = vor.u32 %v1948_v17, %v1773_v16  ;;  %v1821_v34 = vld [vmem:[%s2785_s3 + $0x90] sm:$0xf]  ;;  %v1960_v36 = vld [vmem:[%s2785_s3 + $0x94] sm:$0xf0]  ;;  %v327_v38 = vld [vmem:[%s2249_s21 + $0x68] sm:$0xff] }
  0x2a   : > { %915 = vmatpush.bf16.msrb.mxu1 %v1834_v46  ;;  %814 = vmatpush.bf16.msra.mxu3 %v1854_v5  ;;  %v1822_v37 = vor.u32 %v1960_v36, %v1821_v34  ;;  %v1749_v41 = vld [vmem:[%s2785_s3] sm:$0xf]  ;;  %v1942_v43 = vld [vmem:[%s2785_s3 + $0x4] sm:$0xf0]  ;;  %v328_v48 = vld [vmem:[%s2249_s21 + $0x70] sm:$0xff] }
  0x2b   : > { %v1813_v44 = vld [vmem:[%s2785_s3 + $0x80] sm:$0xf]  ;;  %v1958_v45 = vld [vmem:[%s2785_s3 + $0x84] sm:$0xf0]  ;;  %v1750_v46 = vor.u32 %v1942_v43, %v1749_v41  ;;  %v329_v49 = vld [vmem:[%s2249_s21 + $0x78] sm:$0xff] }
  0x2c   : > { %v332_v50 = vld [vmem:[%s2784_s2] sm:$0x3]  ;;  %v1980_v55 = vld [vmem:[#allocation2 + $0x38] sm:$0xff]  ;;  %v1979_v7 = vld [vmem:[#allocation2 + $0x30] sm:$0xff] }
  0x2d   : > { %867 = vmatpush.bf16.msrb.mxu0 %v1762_v0  ;;  %766 = vmatpush.bf16.msra.mxu2 %v1782_v13  ;;  %v2500_v53 = vperm.slane %v332_v50, 0  ;;  %v1988_v56 = vld [vmem:[#allocation2 + $0x78] sm:$0xff] }
  0x2e   : > { %916 = vmatpush.bf16.msrb.mxu1 %v1826_v8  ;;  %815 = vmatpush.bf16.msra.mxu3 %v1846_v15  ;;  %v1987_v8 = vld [vmem:[#allocation2 + $0x70] sm:$0xff] }
  0x30   : > { %1718 = vmatmul.msk.f32.gmra.mxu0 %vm338_vm0, %v317_v23  ;;  %1734 = vmatmul.msk.f32.gmra.mxu1 %vm338_vm0, %v317_v23  ;;  %v1765_v23 = vld [vmem:[%s2785_s3 + $0x20] sm:$0xf] }
  0x31   : > { %767 = vmatpush.bf16.msra.mxu2 %v1774_v19 }
  0x32   : > { %816 = vmatpush.bf16.msra.mxu3 %v1838_v21 }
  0x36   : > { %817 = vmatpush.bf16.msra.mxu3 %v1830_v28 }
  0x38   : > { %1719 = vmatmul.msk.f32.gmra.mxu0 %vm338_vm0, %v318_v24  ;;  %1735 = vmatmul.msk.f32.gmra.mxu1 %vm338_vm0, %v318_v24  ;;  %v1946_v24 = vld [vmem:[%s2785_s3 + $0x24] sm:$0xf0] }
  0x39   : > { %v1766_v25 = vor.u32 %v1946_v24, %v1765_v23  ;;  %v1978_v23 = vld [vmem:[#allocation2 + $0x28] sm:$0xff] }
  0x3a   : > { %818 = vmatpush.bf16.msra.mxu3 %v1822_v37  ;;  %v1986_v24 = vld [vmem:[#allocation2 + $0x68] sm:$0xff] }
  0x3b   : > { %768 = vmatpush.bf16.msra.mxu2 %v1766_v25 }
  0x40   : > { %1720 = vmatmul.msk.f32.gmra.mxu0 %vm338_vm0, %v319_v31  ;;  %1736 = vmatmul.msk.f32.gmra.mxu1 %vm338_vm0, %v319_v31  ;;  %v1754_v31 = vor.u32 %v1941_v29, %v1751_v30 }
  0x42   : > { %868 = vmatpush.bf16.msrb.mxu0 %v1754_v31 }
  0x48   : > { %1721 = vmatmul.msk.f32.gmra.mxu0 %vm338_vm0, %v320_v32  ;;  %1737 = vmatmul.msk.f32.gmra.mxu1 %vm338_vm0, %v320_v32  ;;  %v1757_v32 = vld [vmem:[%s2785_s3 + $0x10] sm:$0xf] }
  0x49   : > { %v1758_v35 = vor.u32 %v1944_v33, %v1757_v32 }
  0x4b   : > { %769 = vmatpush.bf16.msra.mxu2 %v1758_v35 }
  0x4f   : > { %770 = vmatpush.bf16.msra.mxu2 %v1750_v46 }
  0x50   : > { %1722 = vmatmul.msk.f32.gmra.mxu0 %vm338_vm0, %v321_v39  ;;  %1738 = vmatmul.msk.f32.gmra.mxu1 %vm338_vm0, %v321_v39  ;;  %v1957_v39 = vld [vmem:[%s2785_s3 + $0x84] sm:$0xf] }
  0x53   : > { %1139 = vmatpush.bf16.msrb.mxu2 %v1980_v55 }
  0x57   : > { %1140 = vmatpush.bf16.msrb.mxu2 %v1979_v7 }
  0x58   : > { %1723 = vmatmul.msk.f32.gmra.mxu0 %vm338_vm0, %v322_v40  ;;  %1739 = vmatmul.msk.f32.gmra.mxu1 %vm338_vm0, %v322_v40  ;;  %v1815_v40 = vld [vmem:[%s2785_s3 + $0x88] sm:$0xf0] }
  0x59   : > { %v1818_v42 = vor.u32 %v1957_v39, %v1815_v40  ;;  %v1977_v39 = vld [vmem:[#allocation2 + $0x20] sm:$0xff] }
  0x5a   : > { %v1985_v40 = vld [vmem:[#allocation2 + $0x60] sm:$0xff] }
  0x5b   : > { %917 = vmatpush.bf16.msrb.mxu1 %v1818_v42  ;;  %1141 = vmatpush.bf16.msrb.mxu2 %v1978_v23 }
  0x5f   : > { %1142 = vmatpush.bf16.msrb.mxu2 %v1977_v39 }
  0x60   : > { %1724 = vmatmul.msk.f32.gmra.mxu0 %vm338_vm0, %v323_v47  ;;  %1740 = vmatmul.msk.f32.gmra.mxu1 %vm338_vm0, %v323_v47  ;;  %v1814_v47 = vor.u32 %v1958_v45, %v1813_v44 }
  0x62   : > { %819 = vmatpush.bf16.msra.mxu3 %v1814_v47 }
  0x66   : > { %1188 = vmatpush.bf16.msrb.mxu3 %v1988_v56 }
  0x68   : > { %1725 = vmatmul.msk.f32.gmra.mxu0 %vm338_vm0, %v324_v54  ;;  %1741 = vmatmul.msk.f32.gmra.mxu1 %vm338_vm0, %v324_v54  ;;  %v2502_v54 = vperm.slane %v332_v50, 1 }
  0x6a   : > { %1189 = vmatpush.bf16.msrb.mxu3 %v1987_v8 }
  0x6e   : > { %1190 = vmatpush.bf16.msrb.mxu3 %v1986_v24 }
  0x70   : > { %1726 = vmatmul.msk.f32.gmra.mxu0 %vm338_vm0, %v325_v9  ;;  %1742 = vmatmul.msk.f32.gmra.mxu1 %vm338_vm0, %v325_v9 }
  0x72   : > { %1191 = vmatpush.bf16.msrb.mxu3 %v1985_v40 }
  0x78   : > { %1727 = vmatmul.msk.f32.gmra.mxu0 %vm338_vm0, %v326_v22  ;;  %1743 = vmatmul.msk.f32.gmra.mxu1 %vm338_vm0, %v326_v22 }
  0x80   : > { %1728 = vmatmul.msk.f32.gmra.mxu0 %vm338_vm0, %v327_v38  ;;  %1744 = vmatmul.msk.f32.gmra.mxu1 %vm338_vm0, %v327_v38 }
  0x88   : > { %1729 = vmatmul.msk.f32.gmra.mxu0 %vm338_vm0, %v328_v48  ;;  %1745 = vmatmul.msk.f32.gmra.mxu1 %vm338_vm0, %v328_v48 }
  0x90   : > { %1730 = vmatmul.msk.f32.gmra.mxu0 %vm338_vm0, %v329_v49  ;;  %1746 = vmatmul.msk.f32.gmra.mxu1 %vm338_vm0, %v329_v49 }
  0x95   : > { %v404_v51 = vpop.f32.mrf.mxu0  ;;  %v469_v52 = vpop.f32.mrf.mxu1 }
  0x96   : > { %v405_v57 = vadd.f32 %v404_v51, %v2500_v53  ;;  %v470_v58 = vadd.f32 %v469_v52, %v2502_v54 }
  0x98   : > { %v517_v63 = vmax.f32 %v405_v57, 0.0  ;;  %v518_v0 = vmax.f32 %v470_v58, 0.0  ;;  %v1976_v57 = vld [vmem:[#allocation2 + $0x18] sm:$0xff] }
  0x99   : > { %v1984_v58 = vld [vmem:[#allocation2 + $0x58] sm:$0xff]  ;;  %1143 = vmatpush.bf16.msrb.mxu2 %v1976_v57  ;;  %v597_v57 = vld [vmem:[%s2786_s4] sm:$0x3] }
  0x9a   : > { %1192 = vmatpush.bf16.msrb.mxu3 %v1984_v58 }
  0x9d   : > { %v407_v59 = vpop.f32.mrf.mxu0  ;;  %v472_v60 = vpop.f32.mrf.mxu1 }
  0x9e   : > { %v408_v61 = vadd.f32 %v407_v59, %v2500_v53  ;;  %v473_v62 = vadd.f32 %v472_v60, %v2502_v54 }
  0xa0   : > { %v519_v1 = vmax.f32 %v408_v61, 0.0  ;;  %v520_v2 = vmax.f32 %v473_v62, 0.0 }
  0xa2   : > { %v549_v3 = vpack.c.bf16 %v519_v1, %v517_v63  ;;  %v550_v4 = vpack.c.bf16 %v520_v2, %v518_v0 }
  0xa4   : > { %771 = vmatmul.bf16.vlgmr.msra.gmra.mxu2 %v549_v3  ;;  %820 = vmatmul.bf16.vlgmr.msra.gmra.mxu3 %v550_v4 }
  0xa5   : > { %869 = vmatmul.bf16.vlgmr.msrb.gmra.mxu0 %v549_v3  ;;  %918 = vmatmul.bf16.vlgmr.msrb.gmra.mxu1 %v550_v4  ;;  %v410_v5 = vpop.f32.mrf.mxu0  ;;  %v475_v6 = vpop.f32.mrf.mxu1 }
  0xa6   : > { %v411_v9 = vadd.f32 %v410_v5, %v2500_v53  ;;  %v476_v10 = vadd.f32 %v475_v6, %v2502_v54 }
  0xa8   : > { %v521_v15 = vmax.f32 %v411_v9, 0.0  ;;  %v522_v16 = vmax.f32 %v476_v10, 0.0  ;;  %v1975_v9 = vld [vmem:[#allocation2 + $0x10] sm:$0xff] }
  0xa9   : > { %v1983_v10 = vld [vmem:[#allocation2 + $0x50] sm:$0xff]  ;;  %1144 = vmatpush.bf16.msrb.mxu2 %v1975_v9 }
  0xaa   : > { %1193 = vmatpush.bf16.msrb.mxu3 %v1983_v10 }
  0xad   : > { %v413_v11 = vpop.f32.mrf.mxu0  ;;  %v478_v12 = vpop.f32.mrf.mxu1 }
  0xae   : > { %v414_v13 = vadd.f32 %v413_v11, %v2500_v53  ;;  %v479_v14 = vadd.f32 %v478_v12, %v2502_v54 }
  0xb0   : > { %v523_v17 = vmax.f32 %v414_v13, 0.0  ;;  %v524_v18 = vmax.f32 %v479_v14, 0.0 }
  0xb2   : > { %v551_v19 = vpack.c.bf16 %v523_v17, %v521_v15  ;;  %v552_v20 = vpack.c.bf16 %v524_v18, %v522_v16 }
  0xb4   : > { %776 = vmatmul.bf16.gmra.mxu2 %v551_v19  ;;  %825 = vmatmul.bf16.gmra.mxu3 %v552_v20 }
  0xb5   : > { %874 = vmatmul.bf16.gmra.mxu0 %v551_v19  ;;  %923 = vmatmul.bf16.gmra.mxu1 %v552_v20  ;;  %v416_v21 = vpop.f32.mrf.mxu0  ;;  %v481_v22 = vpop.f32.mrf.mxu1 }
  0xb6   : > { %v417_v25 = vadd.f32 %v416_v21, %v2500_v53  ;;  %v482_v26 = vadd.f32 %v481_v22, %v2502_v54 }
  0xb8   : > { %v525_v31 = vmax.f32 %v417_v25, 0.0  ;;  %v526_v32 = vmax.f32 %v482_v26, 0.0  ;;  %v1974_v25 = vld [vmem:[#allocation2 + $0x8] sm:$0xff] }
  0xb9   : > { %v1982_v26 = vld [vmem:[#allocation2 + $0x48] sm:$0xff]  ;;  %1145 = vmatpush.bf16.msrb.mxu2 %v1974_v25 }
  0xba   : > { %1194 = vmatpush.bf16.msrb.mxu3 %v1982_v26 }
  0xbd   : > { %v419_v27 = vpop.f32.mrf.mxu0  ;;  %v484_v28 = vpop.f32.mrf.mxu1 }
  0xbe   : > { %v420_v29 = vadd.f32 %v419_v27, %v2500_v53  ;;  %v485_v30 = vadd.f32 %v484_v28, %v2502_v54 }
  0xc0   : > { %v527_v33 = vmax.f32 %v420_v29, 0.0  ;;  %v528_v34 = vmax.f32 %v485_v30, 0.0 }
  0xc2   : > { %v553_v35 = vpack.c.bf16 %v527_v33, %v525_v31  ;;  %v554_v36 = vpack.c.bf16 %v528_v34, %v526_v32 }
  0xc4   : > { %781 = vmatmul.bf16.gmra.mxu2 %v553_v35  ;;  %830 = vmatmul.bf16.gmra.mxu3 %v554_v36 }
  0xc5   : > { %879 = vmatmul.bf16.gmra.mxu0 %v553_v35  ;;  %928 = vmatmul.bf16.gmra.mxu1 %v554_v36  ;;  %v422_v37 = vpop.f32.mrf.mxu0  ;;  %v487_v38 = vpop.f32.mrf.mxu1 }
  0xc6   : > { %v423_v41 = vadd.f32 %v422_v37, %v2500_v53  ;;  %v488_v42 = vadd.f32 %v487_v38, %v2502_v54 }
  0xc8   : > { %v529_v47 = vmax.f32 %v423_v41, 0.0  ;;  %v530_v48 = vmax.f32 %v488_v42, 0.0 }
  0xcd   : > { %v425_v43 = vpop.f32.mrf.mxu0  ;;  %v490_v44 = vpop.f32.mrf.mxu1 }
  0xce   : > { %v426_v45 = vadd.f32 %v425_v43, %v2500_v53  ;;  %v491_v46 = vadd.f32 %v490_v44, %v2502_v54  ;;  %v1973_v43 = vld [vmem:[#allocation2] sm:$0xff] }
  0xcf   : > { %1146 = vmatpush.bf16.msrb.mxu2 %v1973_v43 }
  0xd0   : > { %v531_v49 = vmax.f32 %v426_v45, 0.0  ;;  %v532_v50 = vmax.f32 %v491_v46, 0.0 }
  0xd2   : > { %v555_v51 = vpack.c.bf16 %v531_v49, %v529_v47  ;;  %v556_v52 = vpack.c.bf16 %v532_v50, %v530_v48  ;;  %v1981_v48 = vld [vmem:[#allocation2 + $0x40] sm:$0xff] }
  0xd3   : > { %1195 = vmatpush.bf16.msrb.mxu3 %v1981_v48 }
  0xd4   : > { %786 = vmatmul.bf16.gmra.mxu2 %v555_v51  ;;  %835 = vmatmul.bf16.gmra.mxu3 %v556_v52 }
  0xd5   : > { %884 = vmatmul.bf16.gmra.mxu0 %v555_v51  ;;  %933 = vmatmul.bf16.gmra.mxu1 %v556_v52  ;;  %v428_v55 = vpop.f32.mrf.mxu0  ;;  %v493_v56 = vpop.f32.mrf.mxu1 }
  0xd6   : > { %v429_v59 = vadd.f32 %v428_v55, %v2500_v53  ;;  %v494_v60 = vadd.f32 %v493_v56, %v2502_v54 }
  0xd8   : > { %v533_v1 = vmax.f32 %v429_v59, 0.0  ;;  %v534_v2 = vmax.f32 %v494_v60, 0.0 }
  0xdd   : > { %v431_v61 = vpop.f32.mrf.mxu0  ;;  %v496_v62 = vpop.f32.mrf.mxu1 }
  0xde   : > { %v432_v63 = vadd.f32 %v431_v61, %v2500_v53  ;;  %v497_v0 = vadd.f32 %v496_v62, %v2502_v54  ;;  %v2542_v62 = vperm.slane %v597_v57, 0 }
  0xe0   : > { %v535_v3 = vmax.f32 %v432_v63, 0.0  ;;  %v536_v4 = vmax.f32 %v497_v0, 0.0 }
  0xe2   : > { %v557_v5 = vpack.c.bf16 %v535_v3, %v533_v1  ;;  %v558_v6 = vpack.c.bf16 %v536_v4, %v534_v2 }
  0xe4   : > { %791 = vmatmul.bf16.gmra.mxu2 %v557_v5  ;;  %840 = vmatmul.bf16.gmra.mxu3 %v558_v6 }
  0xe5   : > { %889 = vmatmul.bf16.gmra.mxu0 %v557_v5  ;;  %938 = vmatmul.bf16.gmra.mxu1 %v558_v6  ;;  %v434_v7 = vpop.f32.mrf.mxu0  ;;  %v499_v8 = vpop.f32.mrf.mxu1 }
  0xe6   : > { %v435_v11 = vadd.f32 %v434_v7, %v2500_v53  ;;  %v500_v12 = vadd.f32 %v499_v8, %v2502_v54 }
  0xe8   : > { %v537_v17 = vmax.f32 %v435_v11, 0.0  ;;  %v538_v18 = vmax.f32 %v500_v12, 0.0 }
  0xed   : > { %v437_v13 = vpop.f32.mrf.mxu0  ;;  %v502_v14 = vpop.f32.mrf.mxu1 }
  0xee   : > { %v438_v15 = vadd.f32 %v437_v13, %v2500_v53  ;;  %v503_v16 = vadd.f32 %v502_v14, %v2502_v54 }
  0xf0   : > { %v539_v19 = vmax.f32 %v438_v15, 0.0  ;;  %v540_v20 = vmax.f32 %v503_v16, 0.0 }
  0xf2   : > { %v559_v21 = vpack.c.bf16 %v539_v19, %v537_v17  ;;  %v560_v22 = vpack.c.bf16 %v540_v20, %v538_v18 }
  0xf4   : > { %796 = vmatmul.bf16.gmra.mxu2 %v559_v21  ;;  %845 = vmatmul.bf16.gmra.mxu3 %v560_v22 }
  0xf5   : > { %894 = vmatmul.bf16.gmra.mxu0 %v559_v21  ;;  %943 = vmatmul.bf16.gmra.mxu1 %v560_v22  ;;  %v440_v23 = vpop.f32.mrf.mxu0  ;;  %v505_v24 = vpop.f32.mrf.mxu1 }
  0xf6   : > { %v441_v27 = vadd.f32 %v440_v23, %v2500_v53  ;;  %v506_v28 = vadd.f32 %v505_v24, %v2502_v54 }
  0xf8   : > { %v541_v33 = vmax.f32 %v441_v27, 0.0  ;;  %v542_v34 = vmax.f32 %v506_v28, 0.0 }
  0xfd   : > { %v443_v29 = vpop.f32.mrf.mxu0  ;;  %v508_v30 = vpop.f32.mrf.mxu1 }
  0xfe   : > { %v444_v31 = vadd.f32 %v443_v29, %v2500_v53  ;;  %v509_v32 = vadd.f32 %v508_v30, %v2502_v54 }
 0x100   : > { %v543_v35 = vmax.f32 %v444_v31, 0.0  ;;  %v544_v36 = vmax.f32 %v509_v32, 0.0 }
 0x102   : > { %v561_v37 = vpack.c.bf16 %v543_v35, %v541_v33  ;;  %v562_v38 = vpack.c.bf16 %v544_v36, %v542_v34 }
 0x104   : > { %801 = vmatmul.bf16.gmra.mxu2 %v561_v37  ;;  %850 = vmatmul.bf16.gmra.mxu3 %v562_v38 }
 0x105   : > { %899 = vmatmul.bf16.gmra.mxu0 %v561_v37  ;;  %948 = vmatmul.bf16.gmra.mxu1 %v562_v38  ;;  %v446_v39 = vpop.f32.mrf.mxu0  ;;  %v511_v40 = vpop.f32.mrf.mxu1 }
 0x106   : > { %v447_v41 = vadd.f32 %v446_v39, %v2500_v53  ;;  %v512_v42 = vadd.f32 %v511_v40, %v2502_v54 }
 0x108   : > { %v545_v49 = vmax.f32 %v447_v41, 0.0  ;;  %v546_v50 = vmax.f32 %v512_v42, 0.0 }
 0x10d   : > { %v449_v44 = vpop.f32.mrf.mxu0  ;;  %v514_v45 = vpop.f32.mrf.mxu1 }
 0x10e   : > { %v450_v46 = vadd.f32 %v449_v44, %v2500_v53  ;;  %v515_v47 = vadd.f32 %v514_v45, %v2502_v54  ;;  %v2539_v54 = vperm.slane %v597_v57, 1 }
 0x110   : > { %v547_v51 = vmax.f32 %v450_v46, 0.0  ;;  %v548_v52 = vmax.f32 %v515_v47, 0.0 }
 0x112   : > { %v563_v55 = vpack.c.bf16 %v547_v51, %v545_v49  ;;  %v564_v56 = vpack.c.bf16 %v548_v52, %v546_v50 }
 0x114   : > { %806 = vmatmul.bf16.gmra.mxu2 %v563_v55  ;;  %855 = vmatmul.bf16.gmra.mxu3 %v564_v56 }
 0x115   : > { %904 = vmatmul.bf16.gmra.mxu0 %v563_v55  ;;  %953 = vmatmul.bf16.gmra.mxu1 %v564_v56 }
 0x122   : > { %v870_v53 = vpop.f32.mrf.mxu0  ;;  %v919_v58 = vpop.f32.mrf.mxu1 }
 0x123   : > { %v871_v59 = vadd.f32 %v870_v53, %v2539_v54 }
 0x125   : > { %v920_v1 = vadd.f32 %v919_v58, %v871_v59 }
 0x127   : > { %v772_v60 = vpop.f32.mrf.mxu2  ;;  %v821_v61 = vpop.f32.mrf.mxu3  ;;  %v960_v5 = vmax.f32 %v920_v1, 0.0 }
 0x128   : > { %v773_v3 = vadd.f32 %v772_v60, %v2542_v62 }
 0x12a   : > { %v872_v63 = vpop.f32.mrf.mxu0  ;;  %v921_v0 = vpop.f32.mrf.mxu1  ;;  %v822_v9 = vadd.f32 %v821_v61, %v773_v3 }
 0x12b   : > { %v873_v2 = vadd.f32 %v872_v63, %v2539_v54 }
 0x12c   : > { %v959_v15 = vmax.f32 %v822_v9, 0.0 }
 0x12d   : > { %v922_v4 = vadd.f32 %v921_v0, %v873_v2 }
 0x12f   : > { %v962_v6 = vmax.f32 %v922_v4, 0.0  ;;  %v774_v7 = vpop.f32.mrf.mxu2  ;;  %v823_v8 = vpop.f32.mrf.mxu3 }
 0x130   : > { %v775_v10 = vadd.f32 %v774_v7, %v2542_v62 }
 0x131   : > { %v992_v11 = vpack.c.bf16 %v962_v6, %v960_v5 }
 0x132   : > { %v824_v12 = vadd.f32 %v823_v8, %v775_v10  ;;  %v875_v13 = vpop.f32.mrf.mxu0  ;;  %v924_v14 = vpop.f32.mrf.mxu1 }
 0x133   : > { %1196 = vmatmul.bf16.vlgmr.msrb.gmra.mxu3 %v992_v11  ;;  %v876_v18 = vadd.f32 %v875_v13, %v2539_v54 }
 0x134   : > { %v961_v16 = vmax.f32 %v824_v12, 0.0 }
 0x135   : > { %v925_v23 = vadd.f32 %v924_v14, %v876_v18 }
 0x136   : > { %v991_v17 = vpack.c.bf16 %v961_v16, %v959_v15 }
 0x137   : > { %v777_v19 = vpop.f32.mrf.mxu2  ;;  %v826_v20 = vpop.f32.mrf.mxu3  ;;  %v964_v27 = vmax.f32 %v925_v23, 0.0 }
 0x138   : > { %1147 = vmatmul.bf16.vlgmr.msrb.gmra.mxu2 %v991_v17  ;;  %v778_v25 = vadd.f32 %v777_v19, %v2542_v62 }
 0x13a   : > { %v877_v21 = vpop.f32.mrf.mxu0  ;;  %v926_v22 = vpop.f32.mrf.mxu1  ;;  %v827_v31 = vadd.f32 %v826_v20, %v778_v25 }
 0x13b   : > { %v878_v24 = vadd.f32 %v877_v21, %v2539_v54 }
 0x13c   : > { %v963_v37 = vmax.f32 %v827_v31, 0.0 }
 0x13d   : > { %v927_v26 = vadd.f32 %v926_v22, %v878_v24 }
 0x13f   : > { %v966_v28 = vmax.f32 %v927_v26, 0.0  ;;  %v779_v29 = vpop.f32.mrf.mxu2  ;;  %v828_v30 = vpop.f32.mrf.mxu3 }
 0x140   : > { %v780_v32 = vadd.f32 %v779_v29, %v2542_v62 }
 0x141   : > { %v994_v33 = vpack.c.bf16 %v966_v28, %v964_v27 }
 0x142   : > { %v829_v34 = vadd.f32 %v828_v30, %v780_v32  ;;  %v880_v35 = vpop.f32.mrf.mxu0  ;;  %v929_v36 = vpop.f32.mrf.mxu1 }
 0x143   : > { %1201 = vmatmul.bf16.gmra.mxu3 %v994_v33  ;;  %v881_v40 = vadd.f32 %v880_v35, %v2539_v54 }
 0x144   : > { %v965_v38 = vmax.f32 %v829_v34, 0.0 }
 0x145   : > { %v930_v45 = vadd.f32 %v929_v36, %v881_v40 }
 0x146   : > { %v993_v39 = vpack.c.bf16 %v965_v38, %v963_v37 }
 0x147   : > { %v782_v41 = vpop.f32.mrf.mxu2  ;;  %v831_v42 = vpop.f32.mrf.mxu3  ;;  %v968_v49 = vmax.f32 %v930_v45, 0.0 }
 0x148   : > { %1152 = vmatmul.bf16.gmra.mxu2 %v993_v39  ;;  %v783_v47 = vadd.f32 %v782_v41, %v2542_v62 }
 0x14a   : > { %v882_v43 = vpop.f32.mrf.mxu0  ;;  %v931_v44 = vpop.f32.mrf.mxu1  ;;  %v832_v55 = vadd.f32 %v831_v42, %v783_v47 }
 0x14b   : > { %v883_v46 = vadd.f32 %v882_v43, %v2539_v54 }
 0x14c   : > { %v967_v60 = vmax.f32 %v832_v55, 0.0 }
 0x14d   : > { %v932_v48 = vadd.f32 %v931_v44, %v883_v46 }
 0x14f   : > { %v970_v50 = vmax.f32 %v932_v48, 0.0  ;;  %v784_v51 = vpop.f32.mrf.mxu2  ;;  %v833_v52 = vpop.f32.mrf.mxu3 }
 0x150   : > { %v785_v56 = vadd.f32 %v784_v51, %v2542_v62 }
 0x151   : > { %v996_v57 = vpack.c.bf16 %v970_v50, %v968_v49 }
 0x152   : > { %v834_v53 = vadd.f32 %v833_v52, %v785_v56  ;;  %v885_v58 = vpop.f32.mrf.mxu0  ;;  %v934_v59 = vpop.f32.mrf.mxu1 }
 0x153   : > { %1206 = vmatmul.bf16.gmra.mxu3 %v996_v57  ;;  %v886_v0 = vadd.f32 %v885_v58, %v2539_v54 }
 0x154   : > { %v969_v61 = vmax.f32 %v834_v53, 0.0 }
 0x155   : > { %v935_v5 = vadd.f32 %v934_v59, %v886_v0 }
 0x156   : > { %v995_v63 = vpack.c.bf16 %v969_v61, %v967_v60 }
 0x157   : > { %v787_v1 = vpop.f32.mrf.mxu2  ;;  %v836_v2 = vpop.f32.mrf.mxu3  ;;  %v972_v9 = vmax.f32 %v935_v5, 0.0 }
 0x158   : > { %1157 = vmatmul.bf16.gmra.mxu2 %v995_v63  ;;  %v788_v7 = vadd.f32 %v787_v1, %v2542_v62 }
 0x15a   : > { %v887_v3 = vpop.f32.mrf.mxu0  ;;  %v936_v4 = vpop.f32.mrf.mxu1  ;;  %v837_v13 = vadd.f32 %v836_v2, %v788_v7 }
 0x15b   : > { %v888_v6 = vadd.f32 %v887_v3, %v2539_v54 }
 0x15c   : > { %v971_v19 = vmax.f32 %v837_v13, 0.0 }
 0x15d   : > { %v937_v8 = vadd.f32 %v936_v4, %v888_v6 }
 0x15f   : > { %v974_v10 = vmax.f32 %v937_v8, 0.0  ;;  %v789_v11 = vpop.f32.mrf.mxu2  ;;  %v838_v12 = vpop.f32.mrf.mxu3 }
 0x160   : > { %v790_v14 = vadd.f32 %v789_v11, %v2542_v62 }
 0x161   : > { %v998_v15 = vpack.c.bf16 %v974_v10, %v972_v9 }
 0x162   : > { %v839_v16 = vadd.f32 %v838_v12, %v790_v14  ;;  %v890_v17 = vpop.f32.mrf.mxu0  ;;  %v939_v18 = vpop.f32.mrf.mxu1 }
 0x163   : > { %1211 = vmatmul.bf16.gmra.mxu3 %v998_v15  ;;  %v891_v22 = vadd.f32 %v890_v17, %v2539_v54 }
 0x164   : > { %v973_v20 = vmax.f32 %v839_v16, 0.0 }
 0x165   : > { %v940_v27 = vadd.f32 %v939_v18, %v891_v22 }
 0x166   : > { %v997_v21 = vpack.c.bf16 %v973_v20, %v971_v19 }
 0x167   : > { %v792_v23 = vpop.f32.mrf.mxu2  ;;  %v841_v24 = vpop.f32.mrf.mxu3  ;;  %v976_v31 = vmax.f32 %v940_v27, 0.0 }
 0x168   : > { %1162 = vmatmul.bf16.gmra.mxu2 %v997_v21  ;;  %v793_v29 = vadd.f32 %v792_v23, %v2542_v62 }
 0x16a   : > { %v892_v25 = vpop.f32.mrf.mxu0  ;;  %v941_v26 = vpop.f32.mrf.mxu1  ;;  %v842_v35 = vadd.f32 %v841_v24, %v793_v29 }
 0x16b   : > { %v893_v28 = vadd.f32 %v892_v25, %v2539_v54 }
 0x16c   : > { %v975_v41 = vmax.f32 %v842_v35, 0.0 }
 0x16d   : > { %v942_v30 = vadd.f32 %v941_v26, %v893_v28 }
 0x16f   : > { %v978_v32 = vmax.f32 %v942_v30, 0.0  ;;  %v794_v33 = vpop.f32.mrf.mxu2  ;;  %v843_v34 = vpop.f32.mrf.mxu3 }
 0x170   : > { %v795_v36 = vadd.f32 %v794_v33, %v2542_v62 }
 0x171   : > { %v1000_v37 = vpack.c.bf16 %v978_v32, %v976_v31 }
 0x172   : > { %v844_v38 = vadd.f32 %v843_v34, %v795_v36  ;;  %v895_v39 = vpop.f32.mrf.mxu0  ;;  %v944_v40 = vpop.f32.mrf.mxu1 }
 0x173   : > { %1216 = vmatmul.bf16.gmra.mxu3 %v1000_v37  ;;  %v896_v44 = vadd.f32 %v895_v39, %v2539_v54 }
 0x174   : > { %v977_v42 = vmax.f32 %v844_v38, 0.0 }
 0x175   : > { %v945_v49 = vadd.f32 %v944_v40, %v896_v44 }
 0x176   : > { %v999_v43 = vpack.c.bf16 %v977_v42, %v975_v41 }
 0x177   : > { %v797_v45 = vpop.f32.mrf.mxu2  ;;  %v846_v46 = vpop.f32.mrf.mxu3  ;;  %v980_v55 = vmax.f32 %v945_v49, 0.0 }
 0x178   : > { %1167 = vmatmul.bf16.gmra.mxu2 %v999_v43  ;;  %v798_v51 = vadd.f32 %v797_v45, %v2542_v62 }
 0x17a   : > { %v897_v47 = vpop.f32.mrf.mxu0  ;;  %v946_v48 = vpop.f32.mrf.mxu1  ;;  %v847_v58 = vadd.f32 %v846_v46, %v798_v51  ;;  %v1237_v46 = vlaneseq }
 0x17b   : > { %v898_v50 = vadd.f32 %v897_v47, %v2539_v54  ;;  %v2575_v47 = vld [vmem:[#allocation4] ss:$0 sm:$0xff] }
 0x17c   : > { %v979_v1 = vmax.f32 %v847_v58, 0.0 }
 0x17d   : > { %v947_v52 = vadd.f32 %v946_v48, %v898_v50  ;;  %v2577_v48 = vand.u32 127, %v1237_v46 }
 0x17f   : > { %v982_v56 = vmax.f32 %v947_v52, 0.0  ;;  %v799_v57 = vpop.f32.mrf.mxu2  ;;  %v848_v53 = vpop.f32.mrf.mxu3  ;;  %vm1239_vm1 = vcmp.lt.s32.totalorder %v2577_v48, 4 }
 0x180   : > { %v800_v59 = vadd.f32 %v799_v57, %v2542_v62 }
 0x181   : > { %v1002_v60 = vpack.c.bf16 %v982_v56, %v980_v55 }
 0x182   : > { %v849_v61 = vadd.f32 %v848_v53, %v800_v59  ;;  %v900_v63 = vpop.f32.mrf.mxu0  ;;  %v949_v0 = vpop.f32.mrf.mxu1 }
 0x183   : > { %1221 = vmatmul.bf16.gmra.mxu3 %v1002_v60  ;;  %v901_v4 = vadd.f32 %v900_v63, %v2539_v54 }
 0x184   : > { %v981_v2 = vmax.f32 %v849_v61, 0.0 }
 0x185   : > { %v950_v9 = vadd.f32 %v949_v0, %v901_v4 }
 0x186   : > { %v1001_v3 = vpack.c.bf16 %v981_v2, %v979_v1 }
 0x187   : > { %v802_v5 = vpop.f32.mrf.mxu2  ;;  %v851_v6 = vpop.f32.mrf.mxu3  ;;  %v984_v13 = vmax.f32 %v950_v9, 0.0 }
 0x188   : > { %1172 = vmatmul.bf16.gmra.mxu2 %v1001_v3  ;;  %v803_v11 = vadd.f32 %v802_v5, %v2542_v62 }
 0x18a   : > { %v902_v7 = vpop.f32.mrf.mxu0  ;;  %v951_v8 = vpop.f32.mrf.mxu1  ;;  %v852_v17 = vadd.f32 %v851_v6, %v803_v11 }
 0x18b   : > { %v903_v10 = vadd.f32 %v902_v7, %v2539_v54 }
 0x18c   : > { %v983_v23 = vmax.f32 %v852_v17, 0.0 }
 0x18d   : > { %v952_v12 = vadd.f32 %v951_v8, %v903_v10 }
 0x18f   : > { %v986_v14 = vmax.f32 %v952_v12, 0.0  ;;  %v804_v15 = vpop.f32.mrf.mxu2  ;;  %v853_v16 = vpop.f32.mrf.mxu3 }
 0x190   : > { %v805_v18 = vadd.f32 %v804_v15, %v2542_v62 }
 0x191   : > { %v1004_v19 = vpack.c.bf16 %v986_v14, %v984_v13 }
 0x192   : > { %v854_v20 = vadd.f32 %v853_v16, %v805_v18  ;;  %v905_v21 = vpop.f32.mrf.mxu0  ;;  %v954_v22 = vpop.f32.mrf.mxu1 }
 0x193   : > { %1226 = vmatmul.bf16.gmra.mxu3 %v1004_v19  ;;  %v906_v26 = vadd.f32 %v905_v21, %v2539_v54 }
 0x194   : > { %v985_v24 = vmax.f32 %v854_v20, 0.0 }
 0x195   : > { %v955_v30 = vadd.f32 %v954_v22, %v906_v26 }
 0x196   : > { %v1003_v25 = vpack.c.bf16 %v985_v24, %v983_v23 }
 0x197   : > { %v807_v27 = vpop.f32.mrf.mxu2  ;;  %v856_v28 = vpop.f32.mrf.mxu3  ;;  %v988_v35 = vmax.f32 %v955_v30, 0.0 }
 0x198   : > { %1177 = vmatmul.bf16.gmra.mxu2 %v1003_v25  ;;  %v808_v32 = vadd.f32 %v807_v27, %v2542_v62 }
 0x19a   : > { %v907_v29 = vpop.f32.mrf.mxu0  ;;  %v956_v33 = vpop.f32.mrf.mxu1  ;;  %v857_v38 = vadd.f32 %v856_v28, %v808_v32 }
 0x19b   : > { %v908_v31 = vadd.f32 %v907_v29, %v2539_v54 }
 0x19c   : > { %v987_v43 = vmax.f32 %v857_v38, 0.0 }
 0x19d   : > { %v957_v34 = vadd.f32 %v956_v33, %v908_v31 }
 0x19f   : > { %v990_v36 = vmax.f32 %v957_v34, 0.0  ;;  %v809_v37 = vpop.f32.mrf.mxu2  ;;  %v858_v41 = vpop.f32.mrf.mxu3 }
 0x1a0   : > { %v810_v39 = vadd.f32 %v809_v37, %v2542_v62 }
 0x1a1   : > { %v1006_v40 = vpack.c.bf16 %v990_v36, %v988_v35 }
 0x1a2   : > { %v859_v42 = vadd.f32 %v858_v41, %v810_v39 }
 0x1a3   : > { %1231 = vmatmul.bf16.gmra.mxu3 %v1006_v40 }
 0x1a4   : > { %v989_v44 = vmax.f32 %v859_v42, 0.0 }
 0x1a6   : > { %v1005_v45 = vpack.c.bf16 %v989_v44, %v987_v43 }
 0x1a8   : > { %1182 = vmatmul.bf16.gmra.mxu2 %v1005_v45 }
 0x1b6   : > { %v1197_v54 = vpop.f32.mrf.mxu3 }
 0x1bb   : > { %v1148_v49 = vpop.f32.mrf.mxu2 }
 0x1bc   : > { %v1149_v50 = vadd.f32 %v2575_v47, %v1148_v49 }
 0x1be   : > { %v1199_v62 = vpop.f32.mrf.mxu3  ;;  %v1198_v51 = vadd.f32 %v1197_v54, %v1149_v50 }
 0x1c0   : > { %v2583_v52 = vsel %vm1239_vm1, %v1198_v51, -1e+30 }
 0x1c1   : > { %1256 = vmax.xlane.f32.xlu0 %v2583_v52 }
 0x1c3   : > { %v1150_v55 = vpop.f32.mrf.mxu2 }
 0x1c4   : > { %v1151_v56 = vadd.f32 %v2575_v47, %v1150_v55 }
 0x1c6   : > { %v1202_v57 = vpop.f32.mrf.mxu3  ;;  %v1200_v53 = vadd.f32 %v1199_v62, %v1151_v56 }
 0x1c8   : > { %v2589_v58 = vsel %vm1239_vm1, %v1200_v53, -1e+30 }
 0x1c9   : > { %1258 = vmax.xlane.f32.xlu0 %v2589_v58 }
 0x1cb   : > { %v1153_v59 = vpop.f32.mrf.mxu2 }
 0x1cc   : > { %v1154_v60 = vadd.f32 %v2575_v47, %v1153_v59 }
 0x1ce   : > { %v1204_v61 = vpop.f32.mrf.mxu3  ;;  %v1203_v63 = vadd.f32 %v1202_v57, %v1154_v60 }
 0x1d0   : > { %v2595_v0 = vsel %vm1239_vm1, %v1203_v63, -1e+30 }
 0x1d1   : > { %1260 = vmax.xlane.f32.xlu1 %v2595_v0 }
 0x1d3   : > { %v1155_v1 = vpop.f32.mrf.mxu2 }
 0x1d4   : > { %v1156_v2 = vadd.f32 %v2575_v47, %v1155_v1 }
 0x1d6   : > { %v1207_v3 = vpop.f32.mrf.mxu3  ;;  %v1205_v4 = vadd.f32 %v1204_v61, %v1156_v2 }
 0x1d8   : > { %v2601_v5 = vsel %vm1239_vm1, %v1205_v4, -1e+30 }
 0x1d9   : > { %1262 = vmax.xlane.f32.xlu1 %v2601_v5 }
 0x1db   : > { %v1158_v6 = vpop.f32.mrf.mxu2 }
 0x1dc   : > { %v1159_v7 = vadd.f32 %v2575_v47, %v1158_v6 }
 0x1de   : > { %v1209_v8 = vpop.f32.mrf.mxu3  ;;  %v1208_v9 = vadd.f32 %v1207_v3, %v1159_v7 }
 0x1e0   : > { %v2607_v10 = vsel %vm1239_vm1, %v1208_v9, -1e+30 }
 0x1e1   : > { %1264 = vmax.xlane.f32.xlu2 %v2607_v10 }
 0x1e3   : > { %v1160_v11 = vpop.f32.mrf.mxu2 }
 0x1e4   : > { %v1161_v12 = vadd.f32 %v2575_v47, %v1160_v11 }
 0x1e6   : > { %v1212_v13 = vpop.f32.mrf.mxu3  ;;  %v1210_v14 = vadd.f32 %v1209_v8, %v1161_v12 }
 0x1e8   : > { %v2613_v15 = vsel %vm1239_vm1, %v1210_v14, -1e+30 }
 0x1e9   : > { %1266 = vmax.xlane.f32.xlu2 %v2613_v15 }
 0x1eb   : > { %v1163_v16 = vpop.f32.mrf.mxu2 }
 0x1ec   : > { %v1164_v17 = vadd.f32 %v2575_v47, %v1163_v16 }
 0x1ee   : > { %v1214_v18 = vpop.f32.mrf.mxu3  ;;  %v1213_v19 = vadd.f32 %v1212_v13, %v1164_v17 }
 0x1f0   : > { %v2619_v20 = vsel %vm1239_vm1, %v1213_v19, -1e+30 }
 0x1f1   : > { %1268 = vmax.xlane.f32.xlu0 %v2619_v20 }
 0x1f3   : > { %v1165_v21 = vpop.f32.mrf.mxu2 }
 0x1f4   : > { %v1166_v22 = vadd.f32 %v2575_v47, %v1165_v21 }
 0x1f6   : > { %v1217_v23 = vpop.f32.mrf.mxu3  ;;  %v1215_v24 = vadd.f32 %v1214_v18, %v1166_v22 }
 0x1f8   : > { %v2625_v25 = vsel %vm1239_vm1, %v1215_v24, -1e+30 }
 0x1f9   : > { %1270 = vmax.xlane.f32.xlu1 %v2625_v25 }
 0x1fb   : > { %v1168_v26 = vpop.f32.mrf.mxu2 }
 0x1fc   : > { %v1169_v27 = vadd.f32 %v2575_v47, %v1168_v26 }
 0x1fe   : > { %v1219_v28 = vpop.f32.mrf.mxu3  ;;  %v1218_v29 = vadd.f32 %v1217_v23, %v1169_v27 }
 0x200   : > { %v2631_v30 = vsel %vm1239_vm1, %v1218_v29, -1e+30 }
 0x201   : > { %1272 = vmax.xlane.f32.xlu2 %v2631_v30 }
 0x203   : > { %v1170_v31 = vpop.f32.mrf.mxu2 }
 0x204   : > { %v1171_v32 = vadd.f32 %v2575_v47, %v1170_v31 }
 0x206   : > { %v1222_v33 = vpop.f32.mrf.mxu3  ;;  %v1220_v34 = vadd.f32 %v1219_v28, %v1171_v32 }
 0x208   : > { %v2637_v35 = vsel %vm1239_vm1, %v1220_v34, -1e+30 }
 0x209   : > { %1274 = vmax.xlane.f32.xlu0 %v2637_v35 }
 0x20b   : > { %v1173_v36 = vpop.f32.mrf.mxu2 }
 0x20c   : > { %v1174_v37 = vadd.f32 %v2575_v47, %v1173_v36 }
 0x20e   : > { %v1224_v38 = vpop.f32.mrf.mxu3  ;;  %v1223_v39 = vadd.f32 %v1222_v33, %v1174_v37 }
 0x210   : > { %v2643_v40 = vsel %vm1239_vm1, %v1223_v39, -1e+30 }
 0x211   : > { %1276 = vmax.xlane.f32.xlu1 %v2643_v40 }
 0x213   : > { %v1175_v41 = vpop.f32.mrf.mxu2 }
 0x214   : > { %v1176_v42 = vadd.f32 %v2575_v47, %v1175_v41 }
 0x216   : > { %v1225_v43 = vadd.f32 %v1224_v38, %v1176_v42  ;;  %v1227_v44 = vpop.f32.mrf.mxu3 }
 0x218   : > { %v2649_v45 = vsel %vm1239_vm1, %v1225_v43, -1e+30 }
 0x219   : > { %1278 = vmax.xlane.f32.xlu2 %v2649_v45 }
 0x21b   : > { %v1178_v46 = vpop.f32.mrf.mxu2 }
 0x21c   : > { %v1179_v54 = vadd.f32 %v2575_v47, %v1178_v46 }
 0x21e   : > { %v1228_v49 = vadd.f32 %v1227_v44, %v1179_v54  ;;  %v1229_v62 = vpop.f32.mrf.mxu3 }
 0x220   : > { %v2655_v50 = vsel %vm1239_vm1, %v1228_v49, -1e+30 }
 0x221   : > { %1280 = vmax.xlane.f32.xlu0 %v2655_v50 }
 0x223   : > { %v1180_v51 = vpop.f32.mrf.mxu2 }
 0x224   : > { %v1181_v55 = vadd.f32 %v2575_v47, %v1180_v51 }
 0x226   : > { %v1230_v56 = vadd.f32 %v1229_v62, %v1181_v55  ;;  %v1232_v53 = vpop.f32.mrf.mxu3 }
 0x228   : > { %v2661_v57 = vsel %vm1239_vm1, %v1230_v56, -1e+30 }
 0x229   : > { %1282 = vmax.xlane.f32.xlu1 %v2661_v57 }
 0x22b   : > { %v1183_v59 = vpop.f32.mrf.mxu2 }
 0x22c   : > { %v1184_v60 = vadd.f32 %v2575_v47, %v1183_v59 }
 0x22e   : > { %v1233_v61 = vadd.f32 %v1232_v53, %v1184_v60  ;;  %v1234_v4 = vpop.f32.mrf.mxu3 }
 0x230   : > { %v2667_v63 = vsel %vm1239_vm1, %v1233_v61, -1e+30 }
 0x231   : > { %1284 = vmax.xlane.f32.xlu2 %v2667_v63 }
 0x233   : > { %v1185_v1 = vpop.f32.mrf.mxu2 }
 0x234   : > { %v1186_v2 = vadd.f32 %v2575_v47, %v1185_v1  ;;  %v1257_v3 = vpop.xlane.xlu0 %1256 }
 0x235   : > { %v1288_v6 = vsub.f32 %v2583_v52, %v1257_v3 }
 0x236   : > { %v1235_v7 = vadd.f32 %v1234_v4, %v1186_v2 }
 0x237   : > { %v1304_v8 = vmul.f32 1.442695, %v1288_v6 }
 0x238   : > { %v2674_v9 = vsel %vm1239_vm1, %v1235_v7, -1e+30 }
 0x239   : > { %2021 = vpow2.f32 %v1304_v8  ;;  %1286 = vmax.xlane.f32.xlu0 %v2674_v9 }
 0x23c   : > { %v1259_v11 = vpop.xlane.xlu0 %1258 }
 0x23d   : > { %v1289_v12 = vsub.f32 %v2589_v58, %v1259_v11 }
 0x23f   : > { %v2678_v13 = vpop.eup %2021  ;;  %v1306_v14 = vmul.f32 1.442695, %v1289_v12 }
 0x240   : > { %1336 = vadd.xlane.f32.xlu1 %v2678_v13 }
 0x241   : > { %2023 = vpow2.f32 %v1306_v14 }
 0x244   : > { %v1261_v47 = vpop.xlane.xlu1 %1260 }
 0x245   : > { %v1290_v52 = vsub.f32 %v2595_v0, %v1261_v47 }
 0x247   : > { %v2682_v16 = vpop.eup %2023  ;;  %v1308_v48 = vmul.f32 1.442695, %v1290_v52 }
 0x248   : > { %1338 = vadd.xlane.f32.xlu2 %v2682_v16 }
 0x249   : > { %2025 = vpow2.f32 %v1308_v48 }
 0x24c   : > { %v1263_v17 = vpop.xlane.xlu1 %1262 }
 0x24d   : > { %v1291_v18 = vsub.f32 %v2601_v5, %v1263_v17 }
 0x24f   : > { %v2686_v19 = vpop.eup %2025  ;;  %v1310_v58 = vmul.f32 1.442695, %v1291_v18 }
 0x250   : > { %1340 = vadd.xlane.f32.xlu0 %v2686_v19 }
 0x251   : > { %2027 = vpow2.f32 %v1310_v58 }
 0x254   : > { %v1265_v21 = vpop.xlane.xlu2 %1264 }
 0x255   : > { %v1292_v22 = vsub.f32 %v2607_v10, %v1265_v21 }
 0x257   : > { %v2690_v23 = vpop.eup %2027  ;;  %v1312_v0 = vmul.f32 1.442695, %v1292_v22 }
 0x258   : > { %1342 = vadd.xlane.f32.xlu1 %v2690_v23 }
 0x259   : > { %2029 = vpow2.f32 %v1312_v0 }
 0x25c   : > { %v1267_v24 = vpop.xlane.xlu2 %1266 }
 0x25d   : > { %v1293_v26 = vsub.f32 %v2613_v15, %v1267_v24 }
 0x25f   : > { %v2694_v27 = vpop.eup %2029  ;;  %v1314_v5 = vmul.f32 1.442695, %v1293_v26 }
 0x260   : > { %1344 = vadd.xlane.f32.xlu2 %v2694_v27 }
 0x261   : > { %2031 = vpow2.f32 %v1314_v5 }
 0x264   : > { %v1269_v28 = vpop.xlane.xlu0 %1268 }
 0x265   : > { %v1294_v29 = vsub.f32 %v2619_v20, %v1269_v28 }
 0x267   : > { %v2698_v31 = vpop.eup %2031  ;;  %v1316_v10 = vmul.f32 1.442695, %v1294_v29 }
 0x268   : > { %1346 = vadd.xlane.f32.xlu0 %v2698_v31 }
 0x269   : > { %2033 = vpow2.f32 %v1316_v10 }
 0x26c   : > { %v1271_v32 = vpop.xlane.xlu1 %1270 }
 0x26d   : > { %v1295_v33 = vsub.f32 %v2625_v25, %v1271_v32 }
 0x26f   : > { %v2702_v34 = vpop.eup %2033  ;;  %v1318_v15 = vmul.f32 1.442695, %v1295_v33 }
 0x270   : > { %1348 = vadd.xlane.f32.xlu1 %v2702_v34 }
 0x271   : > { %2035 = vpow2.f32 %v1318_v15 }
 0x274   : > { %v1273_v36 = vpop.xlane.xlu2 %1272 }
 0x275   : > { %v1296_v37 = vsub.f32 %v2631_v30, %v1273_v36 }
 0x277   : > { %v2706_v38 = vpop.eup %2035  ;;  %v1320_v20 = vmul.f32 1.442695, %v1296_v37 }
 0x278   : > { %1350 = vadd.xlane.f32.xlu2 %v2706_v38 }
 0x279   : > { %2037 = vpow2.f32 %v1320_v20 }
 0x27c   : > { %v1275_v39 = vpop.xlane.xlu0 %1274 }
 0x27d   : > { %v1297_v41 = vsub.f32 %v2637_v35, %v1275_v39 }
 0x27f   : > { %v2710_v42 = vpop.eup %2037  ;;  %v1322_v25 = vmul.f32 1.442695, %v1297_v41 }
 0x280   : > { %1352 = vadd.xlane.f32.xlu0 %v2710_v42 }
 0x281   : > { %2039 = vpow2.f32 %v1322_v25 }
 0x284   : > { %v1277_v43 = vpop.xlane.xlu1 %1276 }
 0x285   : > { %v1298_v44 = vsub.f32 %v2643_v40, %v1277_v43 }
 0x287   : > { %v2714_v46 = vpop.eup %2039  ;;  %v1324_v30 = vmul.f32 1.442695, %v1298_v44 }
 0x288   : > { %1354 = vadd.xlane.f32.xlu1 %v2714_v46 }
 0x289   : > { %2041 = vpow2.f32 %v1324_v30 }
 0x28c   : > { %v1279_v54 = vpop.xlane.xlu2 %1278 }
 0x28d   : > { %v1299_v49 = vsub.f32 %v2649_v45, %v1279_v54 }
 0x28f   : > { %v2718_v62 = vpop.eup %2041  ;;  %v1326_v35 = vmul.f32 1.442695, %v1299_v49 }
 0x290   : > { %1356 = vadd.xlane.f32.xlu2 %v2718_v62 }
 0x291   : > { %2043 = vpow2.f32 %v1326_v35 }
 0x294   : > { %v1281_v51 = vpop.xlane.xlu0 %1280 }
 0x295   : > { %v1300_v55 = vsub.f32 %v2655_v50, %v1281_v51 }
 0x297   : > { %v2722_v56 = vpop.eup %2043  ;;  %v1328_v40 = vmul.f32 1.442695, %v1300_v55 }
 0x298   : > { %1358 = vadd.xlane.f32.xlu0 %v2722_v56 }
 0x299   : > { %2045 = vpow2.f32 %v1328_v40 }
 0x29c   : > { %v1283_v53 = vpop.xlane.xlu1 %1282 }
 0x29d   : > { %v1301_v59 = vsub.f32 %v2661_v57, %v1283_v53 }
 0x29f   : > { %v2726_v60 = vpop.eup %2045  ;;  %v1330_v45 = vmul.f32 1.442695, %v1301_v59 }
 0x2a0   : > { %1360 = vadd.xlane.f32.xlu1 %v2726_v60 }
 0x2a1   : > { %2047 = vpow2.f32 %v1330_v45 }
 0x2a4   : > { %v1285_v61 = vpop.xlane.xlu2 %1284 }
 0x2a5   : > { %v1302_v1 = vsub.f32 %v2667_v63, %v1285_v61 }
 0x2a7   : > { %v2730_v2 = vpop.eup %2047  ;;  %v1332_v50 = vmul.f32 1.442695, %v1302_v1 }
 0x2a8   : > { %1362 = vadd.xlane.f32.xlu2 %v2730_v2 }
 0x2a9   : > { %2049 = vpow2.f32 %v1332_v50 }
 0x2ac   : > { %v1287_v3 = vpop.xlane.xlu0 %1286 }
 0x2ad   : > { %v1303_v4 = vsub.f32 %v2674_v9, %v1287_v3 }
 0x2af   : > { %v2734_v6 = vpop.eup %2049  ;;  %v1334_v57 = vmul.f32 1.442695, %v1303_v4 }
 0x2b0   : > { %1364 = vadd.xlane.f32.xlu0 %v2734_v6 }
 0x2b1   : > { %2051 = vpow2.f32 %v1334_v57 }
 0x2b3   : > { %v1337_v7 = vpop.xlane.xlu1 %1336 }
 0x2b4   : > { %2053 = vrcp.f32 %v1337_v7  ;;  %v1379_v47 = vand.u32 2147483648, %v1337_v7  ;;  %v1377_v52 = vand.u32 2147483647, %v1337_v7  ;;  %vm1373_vm3 = vweird.f32 %v1337_v7 }
 0x2b6   : > { %v1380_v18 = vor.u32 1.1754944e-38, %v1379_v47  ;;  %vm1378_vm5 = vcmp.eq.f32.partialorder %v1377_v52, 8.507059e+37 }
 0x2b7   : > { %v2737_v8 = vpop.eup %2051 }
 0x2b8   : > { %1366 = vadd.xlane.f32.xlu1 %v2737_v8 }
 0x2ba   : > { %v2054_v63 = vpop.eup %2053 }
 0x2bb   : > { %v1369_v11 = vmul.f32 %v2054_v63, %v1337_v7  ;;  %v1339_v12 = vpop.xlane.xlu2 %1338  ;;  %vm1374_vm2 = vweird.f32 %v2054_v63 }
 0x2bc   : > { %2055 = vrcp.f32 %v1339_v12  ;;  %vm1375_vm4 = vmor %vm1373_vm3, %vm1374_vm2  ;;  %v1394_v5 = vand.u32 2147483648, %v1339_v12  ;;  %v1392_v29 = vand.u32 2147483647, %v1339_v12  ;;  %vm1388_vm7 = vweird.f32 %v1339_v12 }
 0x2bd   : > { %v1370_v14 = vsub.f32 1.0, %v1369_v11 }
 0x2be   : > { %v1395_v33 = vor.u32 1.1754944e-38, %v1394_v5  ;;  %vm1393_vm9 = vcmp.eq.f32.partialorder %v1392_v29, 8.507059e+37 }
 0x2bf   : > { %v1371_v9 = vmul.f32 %v2054_v63, %v1370_v14 }
 0x2c1   : > { %v1372_v48 = vadd.f32 %v2054_v63, %v1371_v9 }
 0x2c2   : > { %v2056_v17 = vpop.eup %2055 }
 0x2c3   : > { %v1376_v58 = vsel %vm1375_vm4, %v2054_v63, %v1372_v48  ;;  %v1384_v21 = vmul.f32 %v2056_v17, %v1339_v12  ;;  %v1341_v22 = vpop.xlane.xlu0 %1340  ;;  %vm1389_vm6 = vweird.f32 %v2056_v17 }
 0x2c4   : > { %v1381_v0 = vsel %vm1378_vm5, %v1380_v18, %v1376_v58  ;;  %2057 = vrcp.f32 %v1341_v22  ;;  %vm1390_vm8 = vmor %vm1388_vm7, %vm1389_vm6  ;;  %v1409_v41 = vand.u32 2147483648, %v1341_v22  ;;  %v1407_v43 = vand.u32 2147483647, %v1341_v22 }
 0x2c5   : > { %v1382_v24 = vmul.f32 %v2678_v13, %v1381_v0  ;;  %v1385_v26 = vsub.f32 1.0, %v1384_v21  ;;  %vm1403_vm11 = vweird.f32 %v1341_v22 }
 0x2c6   : > { %v1410_v54 = vor.u32 1.1754944e-38, %v1409_v41  ;;  %vm1408_vm13 = vcmp.eq.f32.partialorder %v1407_v43, 8.507059e+37 }
 0x2c7   : > { %1608 = vst [vmem:[%s2745_s27] sm:$0xff] %v1382_v24  ;;  %v1386_v28 = vmul.f32 %v2056_v17, %v1385_v26 }
 0x2c9   : > { %v1387_v10 = vadd.f32 %v2056_v17, %v1386_v28 }
 0x2ca   : > { %v2058_v32 = vpop.eup %2057 }
 0x2cb   : > { %v1391_v15 = vsel %vm1390_vm8, %v2056_v17, %v1387_v10  ;;  %v1399_v36 = vmul.f32 %v2058_v32, %v1341_v22  ;;  %v1343_v37 = vpop.xlane.xlu1 %1342  ;;  %vm1404_vm10 = vweird.f32 %v2058_v32 }
 0x2cc   : > { %v1396_v20 = vsel %vm1393_vm9, %v1395_v33, %v1391_v15  ;;  %2059 = vrcp.f32 %v1343_v37  ;;  %vm1405_vm12 = vmor %vm1403_vm11, %vm1404_vm10  ;;  %v1424_v53 = vand.u32 2147483648, %v1343_v37  ;;  %v1422_v45 = vand.u32 2147483647, %v1343_v37 }
 0x2cd   : > { %v1397_v13 = vmul.f32 %v2682_v16, %v1396_v20  ;;  %v1400_v39 = vsub.f32 1.0, %v1399_v36  ;;  %vm1418_vm15 = vweird.f32 %v1343_v37 }
 0x2ce   : > { %v1425_v50 = vor.u32 1.1754944e-38, %v1424_v53  ;;  %vm1423_vm1 = vcmp.eq.f32.partialorder %v1422_v45, 8.507059e+37 }
 0x2cf   : > { %1609 = vst [vmem:[%s2745_s27 + $0x8] sm:$0xff] %v1397_v13  ;;  %v1401_v25 = vmul.f32 %v2058_v32, %v1400_v39 }
 0x2d1   : > { %v1402_v44 = vadd.f32 %v2058_v32, %v1401_v25 }
 0x2d2   : > { %v2060_v30 = vpop.eup %2059 }
 0x2d3   : > { %v1406_v49 = vsel %vm1405_vm12, %v2058_v32, %v1402_v44  ;;  %v1414_v35 = vmul.f32 %v2060_v30, %v1343_v37  ;;  %v1345_v51 = vpop.xlane.xlu2 %1344  ;;  %vm1419_vm14 = vweird.f32 %v2060_v30 }
 0x2d4   : > { %v1411_v55 = vsel %vm1408_vm13, %v1410_v54, %v1406_v49  ;;  %2061 = vrcp.f32 %v1345_v51  ;;  %vm1420_vm0 = vmor %vm1418_vm15, %vm1419_vm14  ;;  %v1439_v11 = vand.u32 2147483648, %v1345_v51  ;;  %v1437_v14 = vand.u32 2147483647, %v1345_v51 }
 0x2d5   : > { %v1412_v16 = vmul.f32 %v2686_v19, %v1411_v55  ;;  %v1415_v40 = vsub.f32 1.0, %v1414_v35  ;;  %vm1433_vm3 = vweird.f32 %v1345_v51 }
 0x2d6   : > { %v1440_v52 = vor.u32 1.1754944e-38, %v1439_v11  ;;  %vm1438_vm5 = vcmp.eq.f32.partialorder %v1437_v14, 8.507059e+37 }
 0x2d7   : > { %1610 = vst [vmem:[%s2745_s27 + $0x10] sm:$0xff] %v1412_v16  ;;  %v1416_v59 = vmul.f32 %v2060_v30, %v1415_v40 }
 0x2d9   : > { %v1417_v61 = vadd.f32 %v2060_v30, %v1416_v59 }
 0x2da   : > { %v2062_v1 = vpop.eup %2061 }
 0x2db   : > { %v1421_v3 = vsel %vm1420_vm0, %v2060_v30, %v1417_v61  ;;  %v1429_v4 = vmul.f32 %v2062_v1, %v1345_v51  ;;  %v1347_v57 = vpop.xlane.xlu0 %1346  ;;  %vm1434_vm2 = vweird.f32 %v2062_v1 }
 0x2dc   : > { %v1426_v7 = vsel %vm1423_vm1, %v1425_v50, %v1421_v3  ;;  %2063 = vrcp.f32 %v1347_v57  ;;  %vm1435_vm4 = vmor %vm1433_vm3, %vm1434_vm2  ;;  %v1454_v22 = vand.u32 2147483648, %v1347_v57  ;;  %v1452_v24 = vand.u32 2147483647, %v1347_v57 }
 0x2dd   : > { %v1427_v19 = vmul.f32 %v2690_v23, %v1426_v7  ;;  %v1430_v63 = vsub.f32 1.0, %v1429_v4  ;;  %vm1448_vm7 = vweird.f32 %v1347_v57 }
 0x2de   : > { %v1455_v28 = vor.u32 1.1754944e-38, %v1454_v22  ;;  %vm1453_vm9 = vcmp.eq.f32.partialorder %v1452_v24, 8.507059e+37 }
 0x2df   : > { %1611 = vst [vmem:[%s2745_s27 + $0x18] sm:$0xff] %v1427_v19  ;;  %v1431_v12 = vmul.f32 %v2062_v1, %v1430_v63 }
 0x2e1   : > { %v1432_v47 = vadd.f32 %v2062_v1, %v1431_v12 }
 0x2e2   : > { %v2064_v9 = vpop.eup %2063 }
 0x2e3   : > { %v1436_v48 = vsel %vm1435_vm4, %v2062_v1, %v1432_v47  ;;  %v1444_v17 = vmul.f32 %v2064_v9, %v1347_v57  ;;  %v1349_v18 = vpop.xlane.xlu1 %1348  ;;  %vm1449_vm6 = vweird.f32 %v2064_v9 }
 0x2e4   : > { %v1441_v58 = vsel %vm1438_vm5, %v1440_v52, %v1436_v48  ;;  %2065 = vrcp.f32 %v1349_v18  ;;  %vm1450_vm8 = vmor %vm1448_vm7, %vm1449_vm6  ;;  %v1469_v36 = vand.u32 2147483648, %v1349_v18  ;;  %v1467_v20 = vand.u32 2147483647, %v1349_v18 }
 0x2e5   : > { %v1442_v23 = vmul.f32 %v2694_v27, %v1441_v58  ;;  %v1445_v21 = vsub.f32 1.0, %v1444_v17  ;;  %vm1463_vm11 = vweird.f32 %v1349_v18 }
 0x2e6   : > { %v1470_v41 = vor.u32 1.1754944e-38, %v1469_v36  ;;  %vm1468_vm13 = vcmp.eq.f32.partialorder %v1467_v20, 8.507059e+37 }
 0x2e7   : > { %1612 = vst [vmem:[%s2745_s27 + $0x20] sm:$0xff] %v1442_v23  ;;  %v1446_v0 = vmul.f32 %v2064_v9, %v1445_v21 }
 0x2e9   : > { %v1447_v26 = vadd.f32 %v2064_v9, %v1446_v0 }
 0x2ea   : > { %v2066_v5 = vpop.eup %2065 }
 0x2eb   : > { %v1451_v29 = vsel %vm1450_vm8, %v2064_v9, %v1447_v26  ;;  %v1459_v10 = vmul.f32 %v2066_v5, %v1349_v18  ;;  %v1351_v32 = vpop.xlane.xlu2 %1350  ;;  %vm1464_vm10 = vweird.f32 %v2066_v5 }
 0x2ec   : > { %v1456_v33 = vsel %vm1453_vm9, %v1455_v28, %v1451_v29  ;;  %2067 = vrcp.f32 %v1351_v32  ;;  %vm1465_vm12 = vmor %vm1463_vm11, %vm1464_vm10  ;;  %v1484_v49 = vand.u32 2147483648, %v1351_v32  ;;  %v1482_v51 = vand.u32 2147483647, %v1351_v32 }
 0x2ed   : > { %v1457_v27 = vmul.f32 %v2698_v31, %v1456_v33  ;;  %v1460_v15 = vsub.f32 1.0, %v1459_v10  ;;  %vm1478_vm15 = vweird.f32 %v1351_v32 }
 0x2ee   : > { %v1485_v40 = vor.u32 1.1754944e-38, %v1484_v49  ;;  %vm1483_vm1 = vcmp.eq.f32.partialorder %v1482_v51, 8.507059e+37 }
 0x2ef   : > { %1613 = vst [vmem:[%s2745_s27 + $0x28] sm:$0xff] %v1457_v27  ;;  %v1461_v37 = vmul.f32 %v2066_v5, %v1460_v15 }
 0x2f1   : > { %v1462_v13 = vadd.f32 %v2066_v5, %v1461_v37 }
 0x2f2   : > { %v2068_v39 = vpop.eup %2067 }
 0x2f3   : > { %v1466_v25 = vsel %vm1465_vm12, %v2066_v5, %v1462_v13  ;;  %v1474_v43 = vmul.f32 %v2068_v39, %v1351_v32  ;;  %v1353_v44 = vpop.xlane.xlu0 %1352  ;;  %vm1479_vm14 = vweird.f32 %v2068_v39 }
 0x2f4   : > { %v1471_v30 = vsel %vm1468_vm13, %v1470_v41, %v1466_v25  ;;  %2069 = vrcp.f32 %v1353_v44  ;;  %vm1480_vm0 = vmor %vm1478_vm15, %vm1479_vm14  ;;  %v1499_v50 = vand.u32 2147483648, %v1353_v44  ;;  %v1497_v4 = vand.u32 2147483647, %v1353_v44 }
 0x2f5   : > { %v1472_v31 = vmul.f32 %v2702_v34, %v1471_v30  ;;  %v1475_v54 = vsub.f32 1.0, %v1474_v43  ;;  %vm1493_vm3 = vweird.f32 %v1353_v44 }
 0x2f6   : > { %v1500_v19 = vor.u32 1.1754944e-38, %v1499_v50  ;;  %vm1498_vm5 = vcmp.eq.f32.partialorder %v1497_v4, 8.507059e+37 }
 0x2f7   : > { %1614 = vst [vmem:[%s2745_s27 + $0x30] sm:$0xff] %v1472_v31  ;;  %v1476_v35 = vmul.f32 %v2068_v39, %v1475_v54 }
 0x2f9   : > { %v1477_v55 = vadd.f32 %v2068_v39, %v1476_v35 }
 0x2fa   : > { %v2070_v16 = vpop.eup %2069 }
 0x2fb   : > { %v1481_v53 = vsel %vm1480_vm0, %v2068_v39, %v1477_v55  ;;  %v1489_v59 = vmul.f32 %v2070_v16, %v1353_v44  ;;  %v1355_v45 = vpop.xlane.xlu1 %1354  ;;  %vm1494_vm2 = vweird.f32 %v2070_v16 }
 0x2fc   : > { %v1486_v61 = vsel %vm1483_vm1, %v1485_v40, %v1481_v53  ;;  %2071 = vrcp.f32 %v1355_v45  ;;  %vm1495_vm4 = vmor %vm1493_vm3, %vm1494_vm2  ;;  %v1514_v9 = vand.u32 2147483648, %v1355_v45  ;;  %v1512_v48 = vand.u32 2147483647, %v1355_v45 }
 0x2fd   : > { %v1487_v34 = vmul.f32 %v2706_v38, %v1486_v61  ;;  %v1490_v1 = vsub.f32 1.0, %v1489_v59  ;;  %vm1508_vm7 = vweird.f32 %v1355_v45 }
 0x2fe   : > { %v1515_v58 = vor.u32 1.1754944e-38, %v1514_v9  ;;  %vm1513_vm9 = vcmp.eq.f32.partialorder %v1512_v48, 8.507059e+37 }
 0x2ff   : > { %1615 = vst [vmem:[%s2745_s27 + $0x38] sm:$0xff] %v1487_v34  ;;  %v1491_v3 = vmul.f32 %v2070_v16, %v1490_v1 }
 0x301   : > { %v1492_v57 = vadd.f32 %v2070_v16, %v1491_v3 }
 0x302   : > { %v2072_v7 = vpop.eup %2071 }
 0x303   : > { %v1496_v63 = vsel %vm1495_vm4, %v2070_v16, %v1492_v57  ;;  %v1504_v11 = vmul.f32 %v2072_v7, %v1355_v45  ;;  %v1357_v12 = vpop.xlane.xlu2 %1356  ;;  %vm1509_vm6 = vweird.f32 %v2072_v7 }
 0x304   : > { %v1501_v14 = vsel %vm1498_vm5, %v1500_v19, %v1496_v63  ;;  %2073 = vrcp.f32 %v1357_v12  ;;  %vm1510_vm8 = vmor %vm1508_vm7, %vm1509_vm6  ;;  %v1529_v26 = vand.u32 2147483648, %v1357_v12  ;;  %v1527_v28 = vand.u32 2147483647, %v1357_v12 }
 0x305   : > { %v1502_v38 = vmul.f32 %v2710_v42, %v1501_v14  ;;  %v1505_v47 = vsub.f32 1.0, %v1504_v11  ;;  %vm1523_vm11 = vweird.f32 %v1357_v12 }
 0x306   : > { %v1530_v32 = vor.u32 1.1754944e-38, %v1529_v26  ;;  %vm1528_vm13 = vcmp.eq.f32.partialorder %v1527_v28, 8.507059e+37 }
 0x307   : > { %1616 = vst [vmem:[%s2745_s27 + $0x40] sm:$0xff] %v1502_v38  ;;  %v1506_v52 = vmul.f32 %v2072_v7, %v1505_v47 }
 0x309   : > { %v1507_v17 = vadd.f32 %v2072_v7, %v1506_v52 }
 0x30a   : > { %v2074_v18 = vpop.eup %2073 }
 0x30b   : > { %v1511_v23 = vsel %vm1510_vm8, %v2072_v7, %v1507_v17  ;;  %v1519_v21 = vmul.f32 %v2074_v18, %v1357_v12  ;;  %v1359_v22 = vpop.xlane.xlu0 %1358  ;;  %vm1524_vm10 = vweird.f32 %v2074_v18 }
 0x30c   : > { %v1516_v0 = vsel %vm1513_vm9, %v1515_v58, %v1511_v23  ;;  %2075 = vrcp.f32 %v1359_v22  ;;  %vm1525_vm12 = vmor %vm1523_vm11, %vm1524_vm10  ;;  %v1544_v20 = vand.u32 2147483648, %v1359_v22  ;;  %v1542_v39 = vand.u32 2147483647, %v1359_v22 }
 0x30d   : > { %v1517_v42 = vmul.f32 %v2714_v46, %v1516_v0  ;;  %v1520_v24 = vsub.f32 1.0, %v1519_v21  ;;  %vm1538_vm15 = vweird.f32 %v1359_v22 }
 0x30e   : > { %v1545_v43 = vor.u32 1.1754944e-38, %v1544_v20  ;;  %vm1543_vm1 = vcmp.eq.f32.partialorder %v1542_v39, 8.507059e+37 }
 0x30f   : > { %1617 = vst [vmem:[%s2745_s27 + $0x48] sm:$0xff] %v1517_v42  ;;  %v1521_v5 = vmul.f32 %v2074_v18, %v1520_v24 }
 0x311   : > { %v1522_v29 = vadd.f32 %v2074_v18, %v1521_v5 }
 0x312   : > { %v2076_v10 = vpop.eup %2075 }
 0x313   : > { %v1526_v33 = vsel %vm1525_vm12, %v2074_v18, %v1522_v29  ;;  %v1534_v27 = vmul.f32 %v2076_v10, %v1359_v22  ;;  %v1361_v15 = vpop.xlane.xlu1 %1360  ;;  %vm1539_vm14 = vweird.f32 %v2076_v10 }
 0x314   : > { %v1531_v36 = vsel %vm1528_vm13, %v1530_v32, %v1526_v33  ;;  %2077 = vrcp.f32 %v1361_v15  ;;  %vm1540_vm0 = vmor %vm1538_vm15, %vm1539_vm14  ;;  %v1559_v35 = vand.u32 2147483648, %v1361_v15  ;;  %v1557_v55 = vand.u32 2147483647, %v1361_v15 }
 0x315   : > { %v1532_v46 = vmul.f32 %v2718_v62, %v1531_v36  ;;  %v1535_v37 = vsub.f32 1.0, %v1534_v27  ;;  %vm1553_vm3 = vweird.f32 %v1361_v15 }
 0x316   : > { %v1560_v53 = vor.u32 1.1754944e-38, %v1559_v35  ;;  %vm1558_vm5 = vcmp.eq.f32.partialorder %v1557_v55, 8.507059e+37 }
 0x317   : > { %1618 = vst [vmem:[%s2745_s27 + $0x50] sm:$0xff] %v1532_v46  ;;  %v1536_v13 = vmul.f32 %v2076_v10, %v1535_v37 }
 0x319   : > { %v1537_v41 = vadd.f32 %v2076_v10, %v1536_v13 }
 0x31a   : > { %v2078_v25 = vpop.eup %2077 }
 0x31b   : > { %v1541_v44 = vsel %vm1540_vm0, %v2076_v10, %v1537_v41  ;;  %v1549_v30 = vmul.f32 %v2078_v25, %v1361_v15  ;;  %v1363_v31 = vpop.xlane.xlu2 %1362  ;;  %vm1554_vm2 = vweird.f32 %v2078_v25 }
 0x31c   : > { %v1546_v54 = vsel %vm1543_vm1, %v1545_v43, %v1541_v44  ;;  %2079 = vrcp.f32 %v1363_v31  ;;  %vm1555_vm4 = vmor %vm1553_vm3, %vm1554_vm2  ;;  %v1574_v50 = vand.u32 2147483648, %v1363_v31  ;;  %v1572_v4 = vand.u32 2147483647, %v1363_v31 }
 0x31d   : > { %v1547_v62 = vmul.f32 %v2722_v56, %v1546_v54  ;;  %v1550_v49 = vsub.f32 1.0, %v1549_v30  ;;  %vm1568_vm7 = vweird.f32 %v1363_v31 }
 0x31e   : > { %v1575_v19 = vor.u32 1.1754944e-38, %v1574_v50  ;;  %vm1573_vm9 = vcmp.eq.f32.partialorder %v1572_v4, 8.507059e+37 }
 0x31f   : > { %1619 = vst [vmem:[%s2745_s27 + $0x58] sm:$0xff] %v1547_v62  ;;  %v1551_v51 = vmul.f32 %v2078_v25, %v1550_v49 }
 0x321   : > { %v1552_v16 = vadd.f32 %v2078_v25, %v1551_v51 }
 0x322   : > { %v2080_v40 = vpop.eup %2079 }
 0x323   : > { %v1556_v59 = vsel %vm1555_vm4, %v2078_v25, %v1552_v16  ;;  %v1564_v45 = vmul.f32 %v2080_v40, %v1363_v31  ;;  %v1365_v61 = vpop.xlane.xlu0 %1364  ;;  %vm1569_vm6 = vweird.f32 %v2080_v40 }
 0x324   : > { %v1561_v34 = vsel %vm1558_vm5, %v1560_v53, %v1556_v59  ;;  %2081 = vrcp.f32 %v1365_v61  ;;  %vm1570_vm8 = vmor %vm1568_vm7, %vm1569_vm6  ;;  %v1589_v47 = vand.u32 2147483648, %v1365_v61  ;;  %v1587_v52 = vand.u32 2147483647, %v1365_v61 }
 0x325   : > { %v1562_v56 = vmul.f32 %v2726_v60, %v1561_v34  ;;  %v1565_v1 = vsub.f32 1.0, %v1564_v45  ;;  %vm1583_vm11 = vweird.f32 %v1365_v61 }
 0x326   : > { %v1590_v18 = vor.u32 1.1754944e-38, %v1589_v47  ;;  %vm1588_vm13 = vcmp.eq.f32.partialorder %v1587_v52, 8.507059e+37 }
 0x327   : > { %1620 = vst [vmem:[%s2745_s27 + $0x60] sm:$0xff] %v1562_v56  ;;  %v1566_v3 = vmul.f32 %v2080_v40, %v1565_v1 }
 0x329   : > { %v1567_v57 = vadd.f32 %v2080_v40, %v1566_v3 }
 0x32a   : > { %v2082_v7 = vpop.eup %2081 }
 0x32b   : > { %v1571_v63 = vsel %vm1570_vm8, %v2080_v40, %v1567_v57  ;;  %v1579_v11 = vmul.f32 %v2082_v7, %v1365_v61  ;;  %v1367_v12 = vpop.xlane.xlu1 %1366  ;;  %vm1584_vm10 = vweird.f32 %v2082_v7 }
 0x32c   : > { %v1576_v14 = vsel %vm1573_vm9, %v1575_v19, %v1571_v63  ;;  %2083 = vrcp.f32 %v1367_v12  ;;  %vm1585_vm12 = vmor %vm1583_vm11, %vm1584_vm10  ;;  %v1604_v0 = vand.u32 2147483648, %v1367_v12  ;;  %v1602_v24 = vand.u32 2147483647, %v1367_v12 }
 0x32d   : > { %v1577_v60 = vmul.f32 %v2730_v2, %v1576_v14  ;;  %v1580_v38 = vsub.f32 1.0, %v1579_v11  ;;  %vm1598_vm15 = vweird.f32 %v1367_v12 }
 0x32e   : > { %v1605_v5 = vor.u32 1.1754944e-38, %v1604_v0  ;;  %vm1603_vm1 = vcmp.eq.f32.partialorder %v1602_v24, 8.507059e+37 }
 0x32f   : > { %1621 = vst [vmem:[%s2745_s27 + $0x68] sm:$0xff] %v1577_v60  ;;  %v1581_v9 = vmul.f32 %v2082_v7, %v1580_v38 }
 0x331   : > { %v1582_v48 = vadd.f32 %v2082_v7, %v1581_v9 }
 0x332   : > { %v2084_v17 = vpop.eup %2083 }
 0x333   : > { %v1586_v58 = vsel %vm1585_vm12, %v2082_v7, %v1582_v48  ;;  %v1594_v23 = vmul.f32 %v2084_v17, %v1367_v12  ;;  %vm1599_vm14 = vweird.f32 %v2084_v17 }
 0x334   : > { %v1591_v21 = vsel %vm1588_vm13, %v1590_v18, %v1586_v58  ;;  %vm1600_vm0 = vmor %vm1598_vm15, %vm1599_vm14 }
 0x335   : > { %v1592_v22 = vmul.f32 %v2734_v6, %v1591_v21  ;;  %v1595_v2 = vsub.f32 1.0, %v1594_v23 }
 0x337   : > { %1622 = vst [vmem:[%s2745_s27 + $0x70] sm:$0xff] %v1592_v22  ;;  %v1596_v42 = vmul.f32 %v2084_v17, %v1595_v2 }
 0x339   : > { %v1597_v26 = vadd.f32 %v2084_v17, %v1596_v42 }
 0x33b   : > { %v1601_v28 = vsel %vm1600_vm0, %v2084_v17, %v1597_v26 }
 0x33c   : > { %v1606_v29 = vsel %vm1603_vm1, %v1605_v5, %v1601_v28 }
 0x33d   : > { %v1607_v10 = vmul.f32 %v2737_v8, %v1606_v29 }
 0x33f   : > { %1623 = vst [vmem:[%s2745_s27 + $0x78] sm:$0xff] %v1607_v10 }
 0x340 PF: > { %s19_s24 = sadd.s32 1, %s2159_s24  }
 0x341   : > { %p16_p7 = scmp.ge.s32.totalorder %s19_s24, 4  }
 0x343   :  { %18 = sbr.rel (!%p16_p7) target bundleno = 2 (0x2), region = 87 }
 0x348   :  { %1646 = vsyncpa [#allocation3], 1 }
 0x349   :  { %1648 = vsyncpa [#allocation3 + $0x1], 1 }
 0x34a   :  { %1649 = vsyncpa [#allocation5], 1 }

</bundles_post_ra>
